<compile_context>
chip_gen: v6e
topology: v6e:2x2x1
jax: 0.10.0
libtpu: 0.0.40
codegen_flags: <defaults>
</compile_context>

<pallas_src>
import jax
import jax.numpy as jnp
from jax import lax
from jax.experimental import pallas as pl
from jax.experimental.pallas import tpu as pltpu

CIN1, COUT1 = 4, 4
CIN2, COUT2 = 4, 1
K = 3
BN_EPS = 1e-5


def _edge_dw_kernel(b1_ref, b2_ref, xp_ref, w1_ref, w2_ref, o_ref, mid_ref):
    # One batch element per grid step (batch dim squeezed by BlockSpec).
    #   xp_ref : (H+2, CIN1*(W+2)+2)  zero-padded input, channels packed on
    #                                 lanes, +2 slack lanes so kw-shifts are
    #                                 plain in-bounds slices.
    #   w1_ref : (COUT1*K*K, CIN1*(W+2))  BN-folded conv1 weights, pre-splatted
    #                                     per lane segment.  Row = (co*K+kh)*K+kw.
    #   w2_ref : (K*K, COUT1*(W+2))       conv2 weights, same packing. Row = kh*K+kw.
    #   b1_ref : (COUT1,) SMEM ; b2_ref : (COUT2,) SMEM
    #   o_ref  : (H, W)
    #   mid_ref: (H+2, COUT1*(W+2)+2) VMEM scratch (packed, padded conv1 output)
    H, W = o_ref.shape
    Wp = W + 2
    SEG = CIN1 * Wp  # 72 lanes carrying all 4 channels

    # Single zero pass over the tiny scratch (3 vregs at 16x16): provides the
    # 1-pixel halo ring + slack lanes for conv2; interior overwritten below.
    mid_ref[...] = jnp.zeros_like(mid_ref)

    # ---- conv1 (BN folded) --------------------------------------------------
    # Shifted operands are built once per (kh, kw) tap and reused across all
    # four output channels; each multiply covers all 4 input channels at once.
    acc = [None] * COUT1
    for kh in range(K):
        band = xp_ref[kh:kh + H, :]                 # (H, SEG+2), one load per kh
        for kw in range(K):
            opnd = band[:, kw:kw + SEG]             # (H, SEG) shifted view
            for co in range(COUT1):
                t = w1_ref[(co * K + kh) * K + kw, :] * opnd
                acc[co] = t if acc[co] is None else acc[co] + t

    # Sum the 4 lane segments (reduction over input channels), add bias, ReLU,
    # and scatter each output channel into its packed segment of `mid`.
    for co in range(COUT1):
        a = acc[co]
        tot = (a[:, 0 * Wp:1 * Wp] + a[:, 2 * Wp:3 * Wp]) + \
              (a[:, 1 * Wp:2 * Wp] + a[:, 3 * Wp:4 * Wp])
        y = jnp.maximum(tot[:, :W] + b1_ref[co], 0.0)            # (H, W)
        mid_ref[1:1 + H, co * Wp + 1: co * Wp + 1 + W] = y

    # ---- conv2 ---------------------------------------------------------------
    acc2 = None
    for kh in range(K):
        band = mid_ref[kh:kh + H, :]
        for kw in range(K):
            opnd = band[:, kw:kw + SEG]
            t = w2_ref[kh * K + kw, :] * opnd
            acc2 = t if acc2 is None else acc2 + t
    tot = (acc2[:, 0 * Wp:1 * Wp] + acc2[:, 2 * Wp:3 * Wp]) + \
          (acc2[:, 1 * Wp:2 * Wp] + acc2[:, 3 * Wp:4 * Wp])
    o_ref[...] = (tot[:, :W] + b2_ref[0]).astype(o_ref.dtype)


def _pack_padded_nchw(x):
    """(N, C, H, W) -> (N, H+2, C*(W+2)+2): zero-pad spatially, pack channels
    side-by-side along the lane axis, add 2 trailing slack lanes."""
    N, C, H, W = x.shape
    xp = jnp.pad(x, ((0, 0), (0, 0), (1, 1), (1, 1)))
    xp = jnp.transpose(xp, (0, 2, 1, 3)).reshape(N, H + 2, C * (W + 2))
    return jnp.pad(xp, ((0, 0), (0, 0), (0, 2)))


def _lane_splat_weights(w, W):
    """(COUT, CIN, K, K) -> (COUT*K*K, CIN*(W+2)) with each w[co,ci,kh,kw]
    splatted across its channel's lane segment."""
    COUT, CIN, KK, _ = w.shape
    wt = jnp.transpose(w, (0, 2, 3, 1)).reshape(COUT * KK * KK, CIN)
    return jnp.repeat(wt, W + 2, axis=-1)


def dw_pallas(x_cat, params):
    """Fused conv3x3 -> (folded BN) -> ReLU -> conv3x3 on (N, 4, H, W)."""
    w1f, b1f, w2, b2 = params
    N, C, H, W = x_cat.shape
    assert C == CIN1
    Wp = W + 2
    SEG = CIN1 * Wp
    SEGT = SEG + 2

    xp = _pack_padded_nchw(x_cat)              # (N, H+2, SEGT), ~10 KB
    w1l = _lane_splat_weights(w1f, W)          # (36, SEG)
    w2l = _lane_splat_weights(w2, W)           # (9,  SEG)

    smem = pl.BlockSpec(memory_space=pltpu.MemorySpace.SMEM)
    out = pl.pallas_call(
        _edge_dw_kernel,
        out_shape=jax.ShapeDtypeStruct((N, H, W), x_cat.dtype),
        grid=(N,),
        in_specs=[smem, smem,
                  pl.BlockSpec((None, H + 2, SEGT), lambda n: (n, 0, 0)),
                  pl.BlockSpec((COUT1 * K * K, SEG), lambda n: (0, 0)),
                  pl.BlockSpec((K * K, SEG), lambda n: (0, 0))],
        out_specs=pl.BlockSpec((None, H, W), lambda n: (n, 0, 0)),
        scratch_shapes=[pltpu.VMEM((H + 2, SEGT), jnp.float32)],
        compiler_params=pltpu.CompilerParams(
            # Batch-parallel grid: v7x's two TensorCores split the work; on
            # v5e/v6e it just restores input-DMA/compute overlap.
            dimension_semantics=("parallel",),
            # Tiny working set (<1 MiB); set explicitly so the same wrapper is
            # safe under v5e's 16 MiB default scoped VMEM when shapes grow.
            vmem_limit_bytes=8 * 1024 * 1024),
    )(b1f, b2, xp, w1l, w2l)
    return out.reshape(N, 1, H, W)


def bilinear_upsample(x, factor):
    # Matches PyTorch nn.Upsample(mode='bilinear', align_corners=False).
    N, C, H, W = x.shape
    return jax.image.resize(x, (N, C, H * factor, W * factor), method="bilinear")


def edge_forward(e_l, params):
    """Mirrors edge.forward: upsample-if-needed, dw(cat), append."""
    e_l = list(e_l)
    if e_l[0].shape[2:] != e_l[1].shape[2:]:
        e_l[1] = bilinear_upsample(e_l[1], 2)
        e_l[2] = bilinear_upsample(e_l[2], 4)
        e_l[3] = bilinear_upsample(e_l[3], 8)
    x_cat = jnp.concatenate(e_l, axis=1)
    assert x_cat.shape[1] == CIN1
    edge_out = dw_pallas(x_cat, params)
    e_l.append(edge_out)
    return e_l


def init_params(key):
    ks = jax.random.split(key, 8)
    w1 = 0.1 * jax.random.normal(ks[0], (COUT1, CIN1, K, K), jnp.float32)
    b1 = 0.1 * jax.random.normal(ks[1], (COUT1,), jnp.float32)
    gamma = 1.0 + 0.1 * jax.random.normal(ks[2], (COUT1,), jnp.float32)
    beta = 0.1 * jax.random.normal(ks[3], (COUT1,), jnp.float32)
    r_mean = 0.05 * jax.random.normal(ks[4], (COUT1,), jnp.float32)
    r_var = jnp.abs(1.0 + 0.1 * jax.random.normal(ks[5], (COUT1,), jnp.float32))
    w2 = 0.1 * jax.random.normal(ks[6], (COUT2, CIN2, K, K), jnp.float32)
    b2 = 0.1 * jax.random.normal(ks[7], (COUT2,), jnp.float32)

    # Fold eval-mode BatchNorm directly into conv1's weights and bias.
    scale = gamma / jnp.sqrt(r_var + BN_EPS)
    shift = beta - r_mean * scale
    w1_folded = w1 * scale[:, None, None, None]
    b1_folded = b1 * scale + shift

    raw = dict(w1=w1, b1=b1, gamma=gamma, beta=beta, mean=r_mean, var=r_var,
               w2=w2, b2=b2)
    packed = (w1_folded, b1_folded, w2, b2)
    return packed, raw


def ref_dw(x_cat, raw):
    """Pure-JAX reference of the dw head (unfolded BN) for correctness check."""
    dn = ("NCHW", "OIHW", "NCHW")
    y = lax.conv_general_dilated(x_cat, raw["w1"], (1, 1), ((1, 1), (1, 1)),
                                 dimension_numbers=dn)
    y = y + raw["b1"][None, :, None, None]
    y = ((y - raw["mean"][None, :, None, None])
         / jnp.sqrt(raw["var"][None, :, None, None] + BN_EPS)
         * raw["gamma"][None, :, None, None] + raw["beta"][None, :, None, None])
    y = jnp.maximum(y, 0.0)
    z = lax.conv_general_dilated(y, raw["w2"], (1, 1), ((1, 1), (1, 1)),
                                 dimension_numbers=dn)
    return z + raw["b2"][None, :, None, None]


if __name__ == "__main__":
    key = jax.random.PRNGKey(0)
    kp, k0, k1, k2, k3 = jax.random.split(key, 5)
    params, raw = init_params(kp)

    N, H, W = 2, 16, 16
    # Four single-channel edge maps at decreasing resolutions (exercises the
    # upsample branch of forward).
    e_l = [
        jax.random.normal(k0, (N, 1, H, W), jnp.float32),
        jax.random.normal(k1, (N, 1, H // 2, W // 2), jnp.float32),
        jax.random.normal(k2, (N, 1, H // 4, W // 4), jnp.float32),
        jax.random.normal(k3, (N, 1, H // 8, W // 8), jnp.float32),
    ]

    out_list = edge_forward(e_l, params)
    edge_out = jax.block_until_ready(out_list[-1])
    assert edge_out.shape == (N, 1, H, W)

    # Correctness check against a pure-JAX reference on the same concat input.
    up = [e_l[0],
          bilinear_upsample(e_l[1], 2),
          bilinear_upsample(e_l[2], 4),
          bilinear_upsample(e_l[3], 8)]
    x_cat = jnp.concatenate(up, axis=1)
    ref = ref_dw(x_cat, raw)
    err = float(jnp.max(jnp.abs(edge_out - ref)))
    assert jnp.allclose(edge_out, ref, atol=1e-4, rtol=1e-4), err

    print("KERNEL_OK")
</pallas_src>

<mosaic_0001>
module attributes {stable_mosaic.version = 11 : i64} {
  func.func @_edge_dw_kernel(%arg0: i32, %arg1: memref<4xf32, #tpu.memory_space<smem>>, %arg2: memref<1xf32, #tpu.memory_space<smem>>, %arg3: memref<1x18x74xf32, #tpu.memory_space<vmem>>, %arg4: memref<36x72xf32, #tpu.memory_space<vmem>>, %arg5: memref<9x72xf32, #tpu.memory_space<vmem>>, %arg6: memref<1x16x16xf32, #tpu.memory_space<vmem>>, %arg7: memref<18x74xf32, #tpu.memory_space<vmem>>) attributes {dimension_semantics = [#tpu.dimension_semantics<parallel>], iteration_bounds = array<i64: 2>, scalar_prefetch = 0 : i64, scratch_operands = 1 : i64, tpu.core_type = #tpu.core_type<tc>, window_params = [{transform_indices = @transform_0, window_bounds = array<i64: 4>}, {transform_indices = @transform_1, window_bounds = array<i64: 1>}, {transform_indices = @transform_2, window_bounds = array<i64: 1, 18, 74>}, {pipeline_mode = #tpu.pipeline_mode<synchronous>, transform_indices = @transform_3, window_bounds = array<i64: 36, 72>}, {pipeline_mode = #tpu.pipeline_mode<synchronous>, transform_indices = @transform_4, window_bounds = array<i64: 9, 72>}, {transform_indices = @transform_5, window_bounds = array<i64: 1, 16, 16>}]} {
    %cst = arith.constant 0.000000e+00 : f32
    %0 = vector.broadcast %cst : f32 to vector<18x74xf32>
    %c0 = arith.constant 0 : index
    %c0_0 = arith.constant 0 : index
    %1 = vector.load %arg7[%c0, %c0_0] : memref<18x74xf32, #tpu.memory_space<vmem>>, vector<18x74xf32>
    tpu.vector_store %arg7[%c0, %c0_0], %0 {strides = array<i32>} : memref<18x74xf32, #tpu.memory_space<vmem>>, vector<18x74xf32>,
    %c0_1 = arith.constant 0 : index
    %c0_2 = arith.constant 0 : index
    %c0_3 = arith.constant 0 : index
    %2 = vector.load %arg3[%c0_1, %c0_2, %c0_3] : memref<1x18x74xf32, #tpu.memory_space<vmem>>, vector<1x16x74xf32>
    %3 = vector.shape_cast %2 : vector<1x16x74xf32> to vector<16x74xf32>
    %4 = vector.extract_strided_slice %3 {offsets = [0, 0], sizes = [16, 72], strides = [1, 1]} : vector<16x74xf32> to vector<16x72xf32>
    %c0_4 = arith.constant 0 : index
    %c0_5 = arith.constant 0 : index
    %5 = vector.load %arg4[%c0_4, %c0_5] : memref<36x72xf32, #tpu.memory_space<vmem>>, vector<1x72xf32>
    %6 = vector.shape_cast %5 : vector<1x72xf32> to vector<72xf32>
    %7 = vector.shape_cast %6 : vector<72xf32> to vector<1x72xf32>
    %8 = vector.broadcast %7 : vector<1x72xf32> to vector<16x72xf32>
    %9 = arith.mulf %8, %4 : vector<16x72xf32>
    %c9 = arith.constant 9 : index
    %c0_6 = arith.constant 0 : index
    %10 = vector.load %arg4[%c9, %c0_6] : memref<36x72xf32, #tpu.memory_space<vmem>>, vector<1x72xf32>
    %11 = vector.shape_cast %10 : vector<1x72xf32> to vector<72xf32>
    %12 = vector.shape_cast %11 : vector<72xf32> to vector<1x72xf32>
    %13 = vector.broadcast %12 : vector<1x72xf32> to vector<16x72xf32>
    %14 = arith.mulf %13, %4 : vector<16x72xf32>
    %c18 = arith.constant 18 : index
    %c0_7 = arith.constant 0 : index
    %15 = vector.load %arg4[%c18, %c0_7] : memref<36x72xf32, #tpu.memory_space<vmem>>, vector<1x72xf32>
    %16 = vector.shape_cast %15 : vector<1x72xf32> to vector<72xf32>
    %17 = vector.shape_cast %16 : vector<72xf32> to vector<1x72xf32>
    %18 = vector.broadcast %17 : vector<1x72xf32> to vector<16x72xf32>
    %19 = arith.mulf %18, %4 : vector<16x72xf32>
    %c27 = arith.constant 27 : index
    %c0_8 = arith.constant 0 : index
    %20 = vector.load %arg4[%c27, %c0_8] : memref<36x72xf32, #tpu.memory_space<vmem>>, vector<1x72xf32>
    %21 = vector.shape_cast %20 : vector<1x72xf32> to vector<72xf32>
    %22 = vector.shape_cast %21 : vector<72xf32> to vector<1x72xf32>
    %23 = vector.broadcast %22 : vector<1x72xf32> to vector<16x72xf32>
    %24 = arith.mulf %23, %4 : vector<16x72xf32>
    %25 = vector.extract_strided_slice %3 {offsets = [0, 1], sizes = [16, 72], strides = [1, 1]} : vector<16x74xf32> to vector<16x72xf32>
    %c1 = arith.constant 1 : index
    %c0_9 = arith.constant 0 : index
    %26 = vector.load %arg4[%c1, %c0_9] : memref<36x72xf32, #tpu.memory_space<vmem>>, vector<1x72xf32>
    %27 = vector.shape_cast %26 : vector<1x72xf32> to vector<72xf32>
    %28 = vector.shape_cast %27 : vector<72xf32> to vector<1x72xf32>
    %29 = vector.broadcast %28 : vector<1x72xf32> to vector<16x72xf32>
    %30 = arith.mulf %29, %25 : vector<16x72xf32>
    %31 = arith.addf %9, %30 : vector<16x72xf32>
    %c10 = arith.constant 10 : index
    %c0_10 = arith.constant 0 : index
    %32 = vector.load %arg4[%c10, %c0_10] : memref<36x72xf32, #tpu.memory_space<vmem>>, vector<1x72xf32>
    %33 = vector.shape_cast %32 : vector<1x72xf32> to vector<72xf32>
    %34 = vector.shape_cast %33 : vector<72xf32> to vector<1x72xf32>
    %35 = vector.broadcast %34 : vector<1x72xf32> to vector<16x72xf32>
    %36 = arith.mulf %35, %25 : vector<16x72xf32>
    %37 = arith.addf %14, %36 : vector<16x72xf32>
    %c19 = arith.constant 19 : index
    %c0_11 = arith.constant 0 : index
    %38 = vector.load %arg4[%c19, %c0_11] : memref<36x72xf32, #tpu.memory_space<vmem>>, vector<1x72xf32>
    %39 = vector.shape_cast %38 : vector<1x72xf32> to vector<72xf32>
    %40 = vector.shape_cast %39 : vector<72xf32> to vector<1x72xf32>
    %41 = vector.broadcast %40 : vector<1x72xf32> to vector<16x72xf32>
    %42 = arith.mulf %41, %25 : vector<16x72xf32>
    %43 = arith.addf %19, %42 : vector<16x72xf32>
    %c28 = arith.constant 28 : index
    %c0_12 = arith.constant 0 : index
    %44 = vector.load %arg4[%c28, %c0_12] : memref<36x72xf32, #tpu.memory_space<vmem>>, vector<1x72xf32>
    %45 = vector.shape_cast %44 : vector<1x72xf32> to vector<72xf32>
    %46 = vector.shape_cast %45 : vector<72xf32> to vector<1x72xf32>
    %47 = vector.broadcast %46 : vector<1x72xf32> to vector<16x72xf32>
    %48 = arith.mulf %47, %25 : vector<16x72xf32>
    %49 = arith.addf %24, %48 : vector<16x72xf32>
    %50 = vector.extract_strided_slice %3 {offsets = [0, 2], sizes = [16, 72], strides = [1, 1]} : vector<16x74xf32> to vector<16x72xf32>
    %c2 = arith.constant 2 : index
    %c0_13 = arith.constant 0 : index
    %51 = vector.load %arg4[%c2, %c0_13] : memref<36x72xf32, #tpu.memory_space<vmem>>, vector<1x72xf32>
    %52 = vector.shape_cast %51 : vector<1x72xf32> to vector<72xf32>
    %53 = vector.shape_cast %52 : vector<72xf32> to vector<1x72xf32>
    %54 = vector.broadcast %53 : vector<1x72xf32> to vector<16x72xf32>
    %55 = arith.mulf %54, %50 : vector<16x72xf32>
    %56 = arith.addf %31, %55 : vector<16x72xf32>
    %c11 = arith.constant 11 : index
    %c0_14 = arith.constant 0 : index
    %57 = vector.load %arg4[%c11, %c0_14] : memref<36x72xf32, #tpu.memory_space<vmem>>, vector<1x72xf32>
    %58 = vector.shape_cast %57 : vector<1x72xf32> to vector<72xf32>
    %59 = vector.shape_cast %58 : vector<72xf32> to vector<1x72xf32>
    %60 = vector.broadcast %59 : vector<1x72xf32> to vector<16x72xf32>
    %61 = arith.mulf %60, %50 : vector<16x72xf32>
    %62 = arith.addf %37, %61 : vector<16x72xf32>
    %c20 = arith.constant 20 : index
    %c0_15 = arith.constant 0 : index
    %63 = vector.load %arg4[%c20, %c0_15] : memref<36x72xf32, #tpu.memory_space<vmem>>, vector<1x72xf32>
    %64 = vector.shape_cast %63 : vector<1x72xf32> to vector<72xf32>
    %65 = vector.shape_cast %64 : vector<72xf32> to vector<1x72xf32>
    %66 = vector.broadcast %65 : vector<1x72xf32> to vector<16x72xf32>
    %67 = arith.mulf %66, %50 : vector<16x72xf32>
    %68 = arith.addf %43, %67 : vector<16x72xf32>
    %c29 = arith.constant 29 : index
    %c0_16 = arith.constant 0 : index
    %69 = vector.load %arg4[%c29, %c0_16] : memref<36x72xf32, #tpu.memory_space<vmem>>, vector<1x72xf32>
    %70 = vector.shape_cast %69 : vector<1x72xf32> to vector<72xf32>
    %71 = vector.shape_cast %70 : vector<72xf32> to vector<1x72xf32>
    %72 = vector.broadcast %71 : vector<1x72xf32> to vector<16x72xf32>
    %73 = arith.mulf %72, %50 : vector<16x72xf32>
    %74 = arith.addf %49, %73 : vector<16x72xf32>
    %c0_17 = arith.constant 0 : index
    %c1_18 = arith.constant 1 : index
    %c0_19 = arith.constant 0 : index
    %75 = vector.load %arg3[%c0_17, %c1_18, %c0_19] : memref<1x18x74xf32, #tpu.memory_space<vmem>>, vector<1x16x74xf32>
    %76 = vector.shape_cast %75 : vector<1x16x74xf32> to vector<16x74xf32>
    %77 = vector.extract_strided_slice %76 {offsets = [0, 0], sizes = [16, 72], strides = [1, 1]} : vector<16x74xf32> to vector<16x72xf32>
    %c3 = arith.constant 3 : index
    %c0_20 = arith.constant 0 : index
    %78 = vector.load %arg4[%c3, %c0_20] : memref<36x72xf32, #tpu.memory_space<vmem>>, vector<1x72xf32>
    %79 = vector.shape_cast %78 : vector<1x72xf32> to vector<72xf32>
    %80 = vector.shape_cast %79 : vector<72xf32> to vector<1x72xf32>
    %81 = vector.broadcast %80 : vector<1x72xf32> to vector<16x72xf32>
    %82 = arith.mulf %81, %77 : vector<16x72xf32>
    %83 = arith.addf %56, %82 : vector<16x72xf32>
    %c12 = arith.constant 12 : index
    %c0_21 = arith.constant 0 : index
    %84 = vector.load %arg4[%c12, %c0_21] : memref<36x72xf32, #tpu.memory_space<vmem>>, vector<1x72xf32>
    %85 = vector.shape_cast %84 : vector<1x72xf32> to vector<72xf32>
    %86 = vector.shape_cast %85 : vector<72xf32> to vector<1x72xf32>
    %87 = vector.broadcast %86 : vector<1x72xf32> to vector<16x72xf32>
    %88 = arith.mulf %87, %77 : vector<16x72xf32>
    %89 = arith.addf %62, %88 : vector<16x72xf32>
    %c21 = arith.constant 21 : index
    %c0_22 = arith.constant 0 : index
    %90 = vector.load %arg4[%c21, %c0_22] : memref<36x72xf32, #tpu.memory_space<vmem>>, vector<1x72xf32>
    %91 = vector.shape_cast %90 : vector<1x72xf32> to vector<72xf32>
    %92 = vector.shape_cast %91 : vector<72xf32> to vector<1x72xf32>
    %93 = vector.broadcast %92 : vector<1x72xf32> to vector<16x72xf32>
    %94 = arith.mulf %93, %77 : vector<16x72xf32>
    %95 = arith.addf %68, %94 : vector<16x72xf32>
    %c30 = arith.constant 30 : index
    %c0_23 = arith.constant 0 : index
    %96 = vector.load %arg4[%c30, %c0_23] : memref<36x72xf32, #tpu.memory_space<vmem>>, vector<1x72xf32>
    %97 = vector.shape_cast %96 : vector<1x72xf32> to vector<72xf32>
    %98 = vector.shape_cast %97 : vector<72xf32> to vector<1x72xf32>
    %99 = vector.broadcast %98 : vector<1x72xf32> to vector<16x72xf32>
    %100 = arith.mulf %99, %77 : vector<16x72xf32>
    %101 = arith.addf %74, %100 : vector<16x72xf32>
    %102 = vector.extract_strided_slice %76 {offsets = [0, 1], sizes = [16, 72], strides = [1, 1]} : vector<16x74xf32> to vector<16x72xf32>
    %c4 = arith.constant 4 : index
    %c0_24 = arith.constant 0 : index
    %103 = vector.load %arg4[%c4, %c0_24] : memref<36x72xf32, #tpu.memory_space<vmem>>, vector<1x72xf32>
    %104 = vector.shape_cast %103 : vector<1x72xf32> to vector<72xf32>
    %105 = vector.shape_cast %104 : vector<72xf32> to vector<1x72xf32>
    %106 = vector.broadcast %105 : vector<1x72xf32> to vector<16x72xf32>
    %107 = arith.mulf %106, %102 : vector<16x72xf32>
    %108 = arith.addf %83, %107 : vector<16x72xf32>
    %c13 = arith.constant 13 : index
    %c0_25 = arith.constant 0 : index
    %109 = vector.load %arg4[%c13, %c0_25] : memref<36x72xf32, #tpu.memory_space<vmem>>, vector<1x72xf32>
    %110 = vector.shape_cast %109 : vector<1x72xf32> to vector<72xf32>
    %111 = vector.shape_cast %110 : vector<72xf32> to vector<1x72xf32>
    %112 = vector.broadcast %111 : vector<1x72xf32> to vector<16x72xf32>
    %113 = arith.mulf %112, %102 : vector<16x72xf32>
    %114 = arith.addf %89, %113 : vector<16x72xf32>
    %c22 = arith.constant 22 : index
    %c0_26 = arith.constant 0 : index
    %115 = vector.load %arg4[%c22, %c0_26] : memref<36x72xf32, #tpu.memory_space<vmem>>, vector<1x72xf32>
    %116 = vector.shape_cast %115 : vector<1x72xf32> to vector<72xf32>
    %117 = vector.shape_cast %116 : vector<72xf32> to vector<1x72xf32>
    %118 = vector.broadcast %117 : vector<1x72xf32> to vector<16x72xf32>
    %119 = arith.mulf %118, %102 : vector<16x72xf32>
    %120 = arith.addf %95, %119 : vector<16x72xf32>
    %c31 = arith.constant 31 : index
    %c0_27 = arith.constant 0 : index
    %121 = vector.load %arg4[%c31, %c0_27] : memref<36x72xf32, #tpu.memory_space<vmem>>, vector<1x72xf32>
    %122 = vector.shape_cast %121 : vector<1x72xf32> to vector<72xf32>
    %123 = vector.shape_cast %122 : vector<72xf32> to vector<1x72xf32>
    %124 = vector.broadcast %123 : vector<1x72xf32> to vector<16x72xf32>
    %125 = arith.mulf %124, %102 : vector<16x72xf32>
    %126 = arith.addf %101, %125 : vector<16x72xf32>
    %127 = vector.extract_strided_slice %76 {offsets = [0, 2], sizes = [16, 72], strides = [1, 1]} : vector<16x74xf32> to vector<16x72xf32>
    %c5 = arith.constant 5 : index
    %c0_28 = arith.constant 0 : index
    %128 = vector.load %arg4[%c5, %c0_28] : memref<36x72xf32, #tpu.memory_space<vmem>>, vector<1x72xf32>
    %129 = vector.shape_cast %128 : vector<1x72xf32> to vector<72xf32>
    %130 = vector.shape_cast %129 : vector<72xf32> to vector<1x72xf32>
    %131 = vector.broadcast %130 : vector<1x72xf32> to vector<16x72xf32>
    %132 = arith.mulf %131, %127 : vector<16x72xf32>
    %133 = arith.addf %108, %132 : vector<16x72xf32>
    %c14 = arith.constant 14 : index
    %c0_29 = arith.constant 0 : index
    %134 = vector.load %arg4[%c14, %c0_29] : memref<36x72xf32, #tpu.memory_space<vmem>>, vector<1x72xf32>
    %135 = vector.shape_cast %134 : vector<1x72xf32> to vector<72xf32>
    %136 = vector.shape_cast %135 : vector<72xf32> to vector<1x72xf32>
    %137 = vector.broadcast %136 : vector<1x72xf32> to vector<16x72xf32>
    %138 = arith.mulf %137, %127 : vector<16x72xf32>
    %139 = arith.addf %114, %138 : vector<16x72xf32>
    %c23 = arith.constant 23 : index
    %c0_30 = arith.constant 0 : index
    %140 = vector.load %arg4[%c23, %c0_30] : memref<36x72xf32, #tpu.memory_space<vmem>>, vector<1x72xf32>
    %141 = vector.shape_cast %140 : vector<1x72xf32> to vector<72xf32>
    %142 = vector.shape_cast %141 : vector<72xf32> to vector<1x72xf32>
    %143 = vector.broadcast %142 : vector<1x72xf32> to vector<16x72xf32>
    %144 = arith.mulf %143, %127 : vector<16x72xf32>
    %145 = arith.addf %120, %144 : vector<16x72xf32>
    %c32 = arith.constant 32 : index
    %c0_31 = arith.constant 0 : index
    %146 = vector.load %arg4[%c32, %c0_31] : memref<36x72xf32, #tpu.memory_space<vmem>>, vector<1x72xf32>
    %147 = vector.shape_cast %146 : vector<1x72xf32> to vector<72xf32>
    %148 = vector.shape_cast %147 : vector<72xf32> to vector<1x72xf32>
    %149 = vector.broadcast %148 : vector<1x72xf32> to vector<16x72xf32>
    %150 = arith.mulf %149, %127 : vector<16x72xf32>
    %151 = arith.addf %126, %150 : vector<16x72xf32>
    %c0_32 = arith.constant 0 : index
    %c2_33 = arith.constant 2 : index
    %c0_34 = arith.constant 0 : index
    %152 = vector.load %arg3[%c0_32, %c2_33, %c0_34] : memref<1x18x74xf32, #tpu.memory_space<vmem>>, vector<1x16x74xf32>
    %153 = vector.shape_cast %152 : vector<1x16x74xf32> to vector<16x74xf32>
    %154 = vector.extract_strided_slice %153 {offsets = [0, 0], sizes = [16, 72], strides = [1, 1]} : vector<16x74xf32> to vector<16x72xf32>
    %c6 = arith.constant 6 : index
    %c0_35 = arith.constant 0 : index
    %155 = vector.load %arg4[%c6, %c0_35] : memref<36x72xf32, #tpu.memory_space<vmem>>, vector<1x72xf32>
    %156 = vector.shape_cast %155 : vector<1x72xf32> to vector<72xf32>
    %157 = vector.shape_cast %156 : vector<72xf32> to vector<1x72xf32>
    %158 = vector.broadcast %157 : vector<1x72xf32> to vector<16x72xf32>
    %159 = arith.mulf %158, %154 : vector<16x72xf32>
    %160 = arith.addf %133, %159 : vector<16x72xf32>
    %c15 = arith.constant 15 : index
    %c0_36 = arith.constant 0 : index
    %161 = vector.load %arg4[%c15, %c0_36] : memref<36x72xf32, #tpu.memory_space<vmem>>, vector<1x72xf32>
    %162 = vector.shape_cast %161 : vector<1x72xf32> to vector<72xf32>
    %163 = vector.shape_cast %162 : vector<72xf32> to vector<1x72xf32>
    %164 = vector.broadcast %163 : vector<1x72xf32> to vector<16x72xf32>
    %165 = arith.mulf %164, %154 : vector<16x72xf32>
    %166 = arith.addf %139, %165 : vector<16x72xf32>
    %c24 = arith.constant 24 : index
    %c0_37 = arith.constant 0 : index
    %167 = vector.load %arg4[%c24, %c0_37] : memref<36x72xf32, #tpu.memory_space<vmem>>, vector<1x72xf32>
    %168 = vector.shape_cast %167 : vector<1x72xf32> to vector<72xf32>
    %169 = vector.shape_cast %168 : vector<72xf32> to vector<1x72xf32>
    %170 = vector.broadcast %169 : vector<1x72xf32> to vector<16x72xf32>
    %171 = arith.mulf %170, %154 : vector<16x72xf32>
    %172 = arith.addf %145, %171 : vector<16x72xf32>
    %c33 = arith.constant 33 : index
    %c0_38 = arith.constant 0 : index
    %173 = vector.load %arg4[%c33, %c0_38] : memref<36x72xf32, #tpu.memory_space<vmem>>, vector<1x72xf32>
    %174 = vector.shape_cast %173 : vector<1x72xf32> to vector<72xf32>
    %175 = vector.shape_cast %174 : vector<72xf32> to vector<1x72xf32>
    %176 = vector.broadcast %175 : vector<1x72xf32> to vector<16x72xf32>
    %177 = arith.mulf %176, %154 : vector<16x72xf32>
    %178 = arith.addf %151, %177 : vector<16x72xf32>
    %179 = vector.extract_strided_slice %153 {offsets = [0, 1], sizes = [16, 72], strides = [1, 1]} : vector<16x74xf32> to vector<16x72xf32>
    %c7 = arith.constant 7 : index
    %c0_39 = arith.constant 0 : index
    %180 = vector.load %arg4[%c7, %c0_39] : memref<36x72xf32, #tpu.memory_space<vmem>>, vector<1x72xf32>
    %181 = vector.shape_cast %180 : vector<1x72xf32> to vector<72xf32>
    %182 = vector.shape_cast %181 : vector<72xf32> to vector<1x72xf32>
    %183 = vector.broadcast %182 : vector<1x72xf32> to vector<16x72xf32>
    %184 = arith.mulf %183, %179 : vector<16x72xf32>
    %185 = arith.addf %160, %184 : vector<16x72xf32>
    %c16 = arith.constant 16 : index
    %c0_40 = arith.constant 0 : index
    %186 = vector.load %arg4[%c16, %c0_40] : memref<36x72xf32, #tpu.memory_space<vmem>>, vector<1x72xf32>
    %187 = vector.shape_cast %186 : vector<1x72xf32> to vector<72xf32>
    %188 = vector.shape_cast %187 : vector<72xf32> to vector<1x72xf32>
    %189 = vector.broadcast %188 : vector<1x72xf32> to vector<16x72xf32>
    %190 = arith.mulf %189, %179 : vector<16x72xf32>
    %191 = arith.addf %166, %190 : vector<16x72xf32>
    %c25 = arith.constant 25 : index
    %c0_41 = arith.constant 0 : index
    %192 = vector.load %arg4[%c25, %c0_41] : memref<36x72xf32, #tpu.memory_space<vmem>>, vector<1x72xf32>
    %193 = vector.shape_cast %192 : vector<1x72xf32> to vector<72xf32>
    %194 = vector.shape_cast %193 : vector<72xf32> to vector<1x72xf32>
    %195 = vector.broadcast %194 : vector<1x72xf32> to vector<16x72xf32>
    %196 = arith.mulf %195, %179 : vector<16x72xf32>
    %197 = arith.addf %172, %196 : vector<16x72xf32>
    %c34 = arith.constant 34 : index
    %c0_42 = arith.constant 0 : index
    %198 = vector.load %arg4[%c34, %c0_42] : memref<36x72xf32, #tpu.memory_space<vmem>>, vector<1x72xf32>
    %199 = vector.shape_cast %198 : vector<1x72xf32> to vector<72xf32>
    %200 = vector.shape_cast %199 : vector<72xf32> to vector<1x72xf32>
    %201 = vector.broadcast %200 : vector<1x72xf32> to vector<16x72xf32>
    %202 = arith.mulf %201, %179 : vector<16x72xf32>
    %203 = arith.addf %178, %202 : vector<16x72xf32>
    %204 = vector.extract_strided_slice %153 {offsets = [0, 2], sizes = [16, 72], strides = [1, 1]} : vector<16x74xf32> to vector<16x72xf32>
    %c8 = arith.constant 8 : index
    %c0_43 = arith.constant 0 : index
    %205 = vector.load %arg4[%c8, %c0_43] : memref<36x72xf32, #tpu.memory_space<vmem>>, vector<1x72xf32>
    %206 = vector.shape_cast %205 : vector<1x72xf32> to vector<72xf32>
    %207 = vector.shape_cast %206 : vector<72xf32> to vector<1x72xf32>
    %208 = vector.broadcast %207 : vector<1x72xf32> to vector<16x72xf32>
    %209 = arith.mulf %208, %204 : vector<16x72xf32>
    %210 = arith.addf %185, %209 : vector<16x72xf32>
    %c17 = arith.constant 17 : index
    %c0_44 = arith.constant 0 : index
    %211 = vector.load %arg4[%c17, %c0_44] : memref<36x72xf32, #tpu.memory_space<vmem>>, vector<1x72xf32>
    %212 = vector.shape_cast %211 : vector<1x72xf32> to vector<72xf32>
    %213 = vector.shape_cast %212 : vector<72xf32> to vector<1x72xf32>
    %214 = vector.broadcast %213 : vector<1x72xf32> to vector<16x72xf32>
    %215 = arith.mulf %214, %204 : vector<16x72xf32>
    %216 = arith.addf %191, %215 : vector<16x72xf32>
    %c26 = arith.constant 26 : index
    %c0_45 = arith.constant 0 : index
    %217 = vector.load %arg4[%c26, %c0_45] : memref<36x72xf32, #tpu.memory_space<vmem>>, vector<1x72xf32>
    %218 = vector.shape_cast %217 : vector<1x72xf32> to vector<72xf32>
    %219 = vector.shape_cast %218 : vector<72xf32> to vector<1x72xf32>
    %220 = vector.broadcast %219 : vector<1x72xf32> to vector<16x72xf32>
    %221 = arith.mulf %220, %204 : vector<16x72xf32>
    %222 = arith.addf %197, %221 : vector<16x72xf32>
    %c35 = arith.constant 35 : index
    %c0_46 = arith.constant 0 : index
    %223 = vector.load %arg4[%c35, %c0_46] : memref<36x72xf32, #tpu.memory_space<vmem>>, vector<1x72xf32>
    %224 = vector.shape_cast %223 : vector<1x72xf32> to vector<72xf32>
    %225 = vector.shape_cast %224 : vector<72xf32> to vector<1x72xf32>
    %226 = vector.broadcast %225 : vector<1x72xf32> to vector<16x72xf32>
    %227 = arith.mulf %226, %204 : vector<16x72xf32>
    %228 = arith.addf %203, %227 : vector<16x72xf32>
    %229 = vector.extract_strided_slice %210 {offsets = [0, 0], sizes = [16, 18], strides = [1, 1]} : vector<16x72xf32> to vector<16x18xf32>
    %230 = vector.extract_strided_slice %210 {offsets = [0, 36], sizes = [16, 18], strides = [1, 1]} : vector<16x72xf32> to vector<16x18xf32>
    %231 = arith.addf %229, %230 : vector<16x18xf32>
    %232 = vector.extract_strided_slice %210 {offsets = [0, 18], sizes = [16, 18], strides = [1, 1]} : vector<16x72xf32> to vector<16x18xf32>
    %233 = vector.extract_strided_slice %210 {offsets = [0, 54], sizes = [16, 18], strides = [1, 1]} : vector<16x72xf32> to vector<16x18xf32>
    %234 = arith.addf %232, %233 : vector<16x18xf32>
    %235 = arith.addf %231, %234 : vector<16x18xf32>
    %236 = vector.extract_strided_slice %235 {offsets = [0, 0], sizes = [16, 16], strides = [1, 1]} : vector<16x18xf32> to vector<16x16xf32>
    %c0_47 = arith.constant 0 : index
    %237 = memref.load %arg1[%c0_47] : memref<4xf32, #tpu.memory_space<smem>>
    %238 = vector.broadcast %237 : f32 to vector<16x16xf32>
    %239 = arith.addf %236, %238 : vector<16x16xf32>
    %cst_48 = arith.constant 0.000000e+00 : f32
    %240 = vector.broadcast %cst_48 : f32 to vector<16x16xf32>
    %241 = arith.maximumf %239, %240 : vector<16x16xf32>
    %c1_49 = arith.constant 1 : index
    %c1_50 = arith.constant 1 : index
    %242 = vector.load %arg7[%c1_49, %c1_50] : memref<18x74xf32, #tpu.memory_space<vmem>>, vector<16x16xf32>
    tpu.vector_store %arg7[%c1_49, %c1_50], %241 {strides = array<i32>} : memref<18x74xf32, #tpu.memory_space<vmem>>, vector<16x16xf32>,
    %243 = vector.extract_strided_slice %216 {offsets = [0, 0], sizes = [16, 18], strides = [1, 1]} : vector<16x72xf32> to vector<16x18xf32>
    %244 = vector.extract_strided_slice %216 {offsets = [0, 36], sizes = [16, 18], strides = [1, 1]} : vector<16x72xf32> to vector<16x18xf32>
    %245 = arith.addf %243, %244 : vector<16x18xf32>
    %246 = vector.extract_strided_slice %216 {offsets = [0, 18], sizes = [16, 18], strides = [1, 1]} : vector<16x72xf32> to vector<16x18xf32>
    %247 = vector.extract_strided_slice %216 {offsets = [0, 54], sizes = [16, 18], strides = [1, 1]} : vector<16x72xf32> to vector<16x18xf32>
    %248 = arith.addf %246, %247 : vector<16x18xf32>
    %249 = arith.addf %245, %248 : vector<16x18xf32>
    %250 = vector.extract_strided_slice %249 {offsets = [0, 0], sizes = [16, 16], strides = [1, 1]} : vector<16x18xf32> to vector<16x16xf32>
    %c1_51 = arith.constant 1 : index
    %251 = memref.load %arg1[%c1_51] : memref<4xf32, #tpu.memory_space<smem>>
    %252 = vector.broadcast %251 : f32 to vector<16x16xf32>
    %253 = arith.addf %250, %252 : vector<16x16xf32>
    %cst_52 = arith.constant 0.000000e+00 : f32
    %254 = vector.broadcast %cst_52 : f32 to vector<16x16xf32>
    %255 = arith.maximumf %253, %254 : vector<16x16xf32>
    %c1_53 = arith.constant 1 : index
    %c19_54 = arith.constant 19 : index
    %256 = vector.load %arg7[%c1_53, %c19_54] : memref<18x74xf32, #tpu.memory_space<vmem>>, vector<16x16xf32>
    tpu.vector_store %arg7[%c1_53, %c19_54], %255 {strides = array<i32>} : memref<18x74xf32, #tpu.memory_space<vmem>>, vector<16x16xf32>,
    %257 = vector.extract_strided_slice %222 {offsets = [0, 0], sizes = [16, 18], strides = [1, 1]} : vector<16x72xf32> to vector<16x18xf32>
    %258 = vector.extract_strided_slice %222 {offsets = [0, 36], sizes = [16, 18], strides = [1, 1]} : vector<16x72xf32> to vector<16x18xf32>
    %259 = arith.addf %257, %258 : vector<16x18xf32>
    %260 = vector.extract_strided_slice %222 {offsets = [0, 18], sizes = [16, 18], strides = [1, 1]} : vector<16x72xf32> to vector<16x18xf32>
    %261 = vector.extract_strided_slice %222 {offsets = [0, 54], sizes = [16, 18], strides = [1, 1]} : vector<16x72xf32> to vector<16x18xf32>
    %262 = arith.addf %260, %261 : vector<16x18xf32>
    %263 = arith.addf %259, %262 : vector<16x18xf32>
    %264 = vector.extract_strided_slice %263 {offsets = [0, 0], sizes = [16, 16], strides = [1, 1]} : vector<16x18xf32> to vector<16x16xf32>
    %c2_55 = arith.constant 2 : index
    %265 = memref.load %arg1[%c2_55] : memref<4xf32, #tpu.memory_space<smem>>
    %266 = vector.broadcast %265 : f32 to vector<16x16xf32>
    %267 = arith.addf %264, %266 : vector<16x16xf32>
    %cst_56 = arith.constant 0.000000e+00 : f32
    %268 = vector.broadcast %cst_56 : f32 to vector<16x16xf32>
    %269 = arith.maximumf %267, %268 : vector<16x16xf32>
    %c1_57 = arith.constant 1 : index
    %c37 = arith.constant 37 : index
    %270 = vector.load %arg7[%c1_57, %c37] : memref<18x74xf32, #tpu.memory_space<vmem>>, vector<16x16xf32>
    tpu.vector_store %arg7[%c1_57, %c37], %269 {strides = array<i32>} : memref<18x74xf32, #tpu.memory_space<vmem>>, vector<16x16xf32>,
    %271 = vector.extract_strided_slice %228 {offsets = [0, 0], sizes = [16, 18], strides = [1, 1]} : vector<16x72xf32> to vector<16x18xf32>
    %272 = vector.extract_strided_slice %228 {offsets = [0, 36], sizes = [16, 18], strides = [1, 1]} : vector<16x72xf32> to vector<16x18xf32>
    %273 = arith.addf %271, %272 : vector<16x18xf32>
    %274 = vector.extract_strided_slice %228 {offsets = [0, 18], sizes = [16, 18], strides = [1, 1]} : vector<16x72xf32> to vector<16x18xf32>
    %275 = vector.extract_strided_slice %228 {offsets = [0, 54], sizes = [16, 18], strides = [1, 1]} : vector<16x72xf32> to vector<16x18xf32>
    %276 = arith.addf %274, %275 : vector<16x18xf32>
    %277 = arith.addf %273, %276 : vector<16x18xf32>
    %278 = vector.extract_strided_slice %277 {offsets = [0, 0], sizes = [16, 16], strides = [1, 1]} : vector<16x18xf32> to vector<16x16xf32>
    %c3_58 = arith.constant 3 : index
    %279 = memref.load %arg1[%c3_58] : memref<4xf32, #tpu.memory_space<smem>>
    %280 = vector.broadcast %279 : f32 to vector<16x16xf32>
    %281 = arith.addf %278, %280 : vector<16x16xf32>
    %cst_59 = arith.constant 0.000000e+00 : f32
    %282 = vector.broadcast %cst_59 : f32 to vector<16x16xf32>
    %283 = arith.maximumf %281, %282 : vector<16x16xf32>
    %c1_60 = arith.constant 1 : index
    %c55 = arith.constant 55 : index
    %284 = vector.load %arg7[%c1_60, %c55] : memref<18x74xf32, #tpu.memory_space<vmem>>, vector<16x16xf32>
    tpu.vector_store %arg7[%c1_60, %c55], %283 {strides = array<i32>} : memref<18x74xf32, #tpu.memory_space<vmem>>, vector<16x16xf32>,
    %c0_61 = arith.constant 0 : index
    %c0_62 = arith.constant 0 : index
    %285 = vector.load %arg7[%c0_61, %c0_62] : memref<18x74xf32, #tpu.memory_space<vmem>>, vector<16x74xf32>
    %286 = vector.extract_strided_slice %285 {offsets = [0, 0], sizes = [16, 72], strides = [1, 1]} : vector<16x74xf32> to vector<16x72xf32>
    %c0_63 = arith.constant 0 : index
    %c0_64 = arith.constant 0 : index
    %287 = vector.load %arg5[%c0_63, %c0_64] : memref<9x72xf32, #tpu.memory_space<vmem>>, vector<1x72xf32>
    %288 = vector.shape_cast %287 : vector<1x72xf32> to vector<72xf32>
    %289 = vector.shape_cast %288 : vector<72xf32> to vector<1x72xf32>
    %290 = vector.broadcast %289 : vector<1x72xf32> to vector<16x72xf32>
    %291 = arith.mulf %290, %286 : vector<16x72xf32>
    %292 = vector.extract_strided_slice %285 {offsets = [0, 1], sizes = [16, 72], strides = [1, 1]} : vector<16x74xf32> to vector<16x72xf32>
    %c1_65 = arith.constant 1 : index
    %c0_66 = arith.constant 0 : index
    %293 = vector.load %arg5[%c1_65, %c0_66] : memref<9x72xf32, #tpu.memory_space<vmem>>, vector<1x72xf32>
    %294 = vector.shape_cast %293 : vector<1x72xf32> to vector<72xf32>
    %295 = vector.shape_cast %294 : vector<72xf32> to vector<1x72xf32>
    %296 = vector.broadcast %295 : vector<1x72xf32> to vector<16x72xf32>
    %297 = arith.mulf %296, %292 : vector<16x72xf32>
    %298 = arith.addf %291, %297 : vector<16x72xf32>
    %299 = vector.extract_strided_slice %285 {offsets = [0, 2], sizes = [16, 72], strides = [1, 1]} : vector<16x74xf32> to vector<16x72xf32>
    %c2_67 = arith.constant 2 : index
    %c0_68 = arith.constant 0 : index
    %300 = vector.load %arg5[%c2_67, %c0_68] : memref<9x72xf32, #tpu.memory_space<vmem>>, vector<1x72xf32>
    %301 = vector.shape_cast %300 : vector<1x72xf32> to vector<72xf32>
    %302 = vector.shape_cast %301 : vector<72xf32> to vector<1x72xf32>
    %303 = vector.broadcast %302 : vector<1x72xf32> to vector<16x72xf32>
    %304 = arith.mulf %303, %299 : vector<16x72xf32>
    %305 = arith.addf %298, %304 : vector<16x72xf32>
    %c1_69 = arith.constant 1 : index
    %c0_70 = arith.constant 0 : index
    %306 = vector.load %arg7[%c1_69, %c0_70] : memref<18x74xf32, #tpu.memory_space<vmem>>, vector<16x74xf32>
    %307 = vector.extract_strided_slice %306 {offsets = [0, 0], sizes = [16, 72], strides = [1, 1]} : vector<16x74xf32> to vector<16x72xf32>
    %c3_71 = arith.constant 3 : index
    %c0_72 = arith.constant 0 : index
    %308 = vector.load %arg5[%c3_71, %c0_72] : memref<9x72xf32, #tpu.memory_space<vmem>>, vector<1x72xf32>
    %309 = vector.shape_cast %308 : vector<1x72xf32> to vector<72xf32>
    %310 = vector.shape_cast %309 : vector<72xf32> to vector<1x72xf32>
    %311 = vector.broadcast %310 : vector<1x72xf32> to vector<16x72xf32>
    %312 = arith.mulf %311, %307 : vector<16x72xf32>
    %313 = arith.addf %305, %312 : vector<16x72xf32>
    %314 = vector.extract_strided_slice %306 {offsets = [0, 1], sizes = [16, 72], strides = [1, 1]} : vector<16x74xf32> to vector<16x72xf32>
    %c4_73 = arith.constant 4 : index
    %c0_74 = arith.constant 0 : index
    %315 = vector.load %arg5[%c4_73, %c0_74] : memref<9x72xf32, #tpu.memory_space<vmem>>, vector<1x72xf32>
    %316 = vector.shape_cast %315 : vector<1x72xf32> to vector<72xf32>
    %317 = vector.shape_cast %316 : vector<72xf32> to vector<1x72xf32>
    %318 = vector.broadcast %317 : vector<1x72xf32> to vector<16x72xf32>
    %319 = arith.mulf %318, %314 : vector<16x72xf32>
    %320 = arith.addf %313, %319 : vector<16x72xf32>
    %321 = vector.extract_strided_slice %306 {offsets = [0, 2], sizes = [16, 72], strides = [1, 1]} : vector<16x74xf32> to vector<16x72xf32>
    %c5_75 = arith.constant 5 : index
    %c0_76 = arith.constant 0 : index
    %322 = vector.load %arg5[%c5_75, %c0_76] : memref<9x72xf32, #tpu.memory_space<vmem>>, vector<1x72xf32>
    %323 = vector.shape_cast %322 : vector<1x72xf32> to vector<72xf32>
    %324 = vector.shape_cast %323 : vector<72xf32> to vector<1x72xf32>
    %325 = vector.broadcast %324 : vector<1x72xf32> to vector<16x72xf32>
    %326 = arith.mulf %325, %321 : vector<16x72xf32>
    %327 = arith.addf %320, %326 : vector<16x72xf32>
    %c2_77 = arith.constant 2 : index
    %c0_78 = arith.constant 0 : index
    %328 = vector.load %arg7[%c2_77, %c0_78] : memref<18x74xf32, #tpu.memory_space<vmem>>, vector<16x74xf32>
    %329 = vector.extract_strided_slice %328 {offsets = [0, 0], sizes = [16, 72], strides = [1, 1]} : vector<16x74xf32> to vector<16x72xf32>
    %c6_79 = arith.constant 6 : index
    %c0_80 = arith.constant 0 : index
    %330 = vector.load %arg5[%c6_79, %c0_80] : memref<9x72xf32, #tpu.memory_space<vmem>>, vector<1x72xf32>
    %331 = vector.shape_cast %330 : vector<1x72xf32> to vector<72xf32>
    %332 = vector.shape_cast %331 : vector<72xf32> to vector<1x72xf32>
    %333 = vector.broadcast %332 : vector<1x72xf32> to vector<16x72xf32>
    %334 = arith.mulf %333, %329 : vector<16x72xf32>
    %335 = arith.addf %327, %334 : vector<16x72xf32>
    %336 = vector.extract_strided_slice %328 {offsets = [0, 1], sizes = [16, 72], strides = [1, 1]} : vector<16x74xf32> to vector<16x72xf32>
    %c7_81 = arith.constant 7 : index
    %c0_82 = arith.constant 0 : index
    %337 = vector.load %arg5[%c7_81, %c0_82] : memref<9x72xf32, #tpu.memory_space<vmem>>, vector<1x72xf32>
    %338 = vector.shape_cast %337 : vector<1x72xf32> to vector<72xf32>
    %339 = vector.shape_cast %338 : vector<72xf32> to vector<1x72xf32>
    %340 = vector.broadcast %339 : vector<1x72xf32> to vector<16x72xf32>
    %341 = arith.mulf %340, %336 : vector<16x72xf32>
    %342 = arith.addf %335, %341 : vector<16x72xf32>
    %343 = vector.extract_strided_slice %328 {offsets = [0, 2], sizes = [16, 72], strides = [1, 1]} : vector<16x74xf32> to vector<16x72xf32>
    %c8_83 = arith.constant 8 : index
    %c0_84 = arith.constant 0 : index
    %344 = vector.load %arg5[%c8_83, %c0_84] : memref<9x72xf32, #tpu.memory_space<vmem>>, vector<1x72xf32>
    %345 = vector.shape_cast %344 : vector<1x72xf32> to vector<72xf32>
    %346 = vector.shape_cast %345 : vector<72xf32> to vector<1x72xf32>
    %347 = vector.broadcast %346 : vector<1x72xf32> to vector<16x72xf32>
    %348 = arith.mulf %347, %343 : vector<16x72xf32>
    %349 = arith.addf %342, %348 : vector<16x72xf32>
    %350 = vector.extract_strided_slice %349 {offsets = [0, 0], sizes = [16, 18], strides = [1, 1]} : vector<16x72xf32> to vector<16x18xf32>
    %351 = vector.extract_strided_slice %349 {offsets = [0, 36], sizes = [16, 18], strides = [1, 1]} : vector<16x72xf32> to vector<16x18xf32>
    %352 = arith.addf %350, %351 : vector<16x18xf32>
    %353 = vector.extract_strided_slice %349 {offsets = [0, 18], sizes = [16, 18], strides = [1, 1]} : vector<16x72xf32> to vector<16x18xf32>
    %354 = vector.extract_strided_slice %349 {offsets = [0, 54], sizes = [16, 18], strides = [1, 1]} : vector<16x72xf32> to vector<16x18xf32>
    %355 = arith.addf %353, %354 : vector<16x18xf32>
    %356 = arith.addf %352, %355 : vector<16x18xf32>
    %357 = vector.extract_strided_slice %356 {offsets = [0, 0], sizes = [16, 16], strides = [1, 1]} : vector<16x18xf32> to vector<16x16xf32>
    %c0_85 = arith.constant 0 : index
    %358 = memref.load %arg2[%c0_85] : memref<1xf32, #tpu.memory_space<smem>>
    %359 = vector.broadcast %358 : f32 to vector<16x16xf32>
    %360 = arith.addf %357, %359 : vector<16x16xf32>
    %c0_86 = arith.constant 0 : index
    %c0_87 = arith.constant 0 : index
    %c0_88 = arith.constant 0 : index
    %361 = vector.load %arg6[%c0_86, %c0_87, %c0_88] : memref<1x16x16xf32, #tpu.memory_space<vmem>>, vector<1x16x16xf32>
    %362 = vector.shape_cast %361 : vector<1x16x16xf32> to vector<16x16xf32>
    %363 = vector.shape_cast %360 : vector<16x16xf32> to vector<1x16x16xf32>
    tpu.vector_store %arg6[%c0_86, %c0_87, %c0_88], %363 {strides = array<i32>} : memref<1x16x16xf32, #tpu.memory_space<vmem>>, vector<1x16x16xf32>,
    return
  }
  func.func @transform_0(%arg0: i32) -> i32 {
    %c0_i32 = arith.constant 0 : i32
    %c0_i32_0 = arith.constant 0 : i32
    return %c0_i32 : i32
  }
  func.func @transform_1(%arg0: i32) -> i32 {
    %c0_i32 = arith.constant 0 : i32
    %c0_i32_0 = arith.constant 0 : i32
    return %c0_i32 : i32
  }
  func.func @transform_2(%arg0: i32) -> (i32, i32, i32) {
    %c0_i32 = arith.constant 0 : i32
    %c0_i32_0 = arith.constant 0 : i32
    %c0_i32_1 = arith.constant 0 : i32
    return %arg0, %c0_i32, %c0_i32_0 : i32, i32, i32
  }
  func.func @transform_3(%arg0: i32) -> (i32, i32) {
    %c0_i32 = arith.constant 0 : i32
    %c0_i32_0 = arith.constant 0 : i32
    %c0_i32_1 = arith.constant 0 : i32
    return %c0_i32, %c0_i32_0 : i32, i32
  }
  func.func @transform_4(%arg0: i32) -> (i32, i32) {
    %c0_i32 = arith.constant 0 : i32
    %c0_i32_0 = arith.constant 0 : i32
    %c0_i32_1 = arith.constant 0 : i32
    return %c0_i32, %c0_i32_0 : i32, i32
  }
  func.func @transform_5(%arg0: i32) -> (i32, i32, i32) {
    %c0_i32 = arith.constant 0 : i32
    %c0_i32_0 = arith.constant 0 : i32
    %c0_i32_1 = arith.constant 0 : i32
    return %arg0, %c0_i32, %c0_i32_0 : i32, i32, i32
  }
}

</mosaic_0001>

<bundles_post_ra>
// kernel: tpu_custom_call.1
= control target key start
LH: loop header
LB: loop body
LE: loop exit
PB: predicated region body
PF: predicated region fallthrough
CT: control target
= control target key end

     0   :  { %s1599_s0 = inlined_call_operand.vmem [shape: f32[4], index: 0, kind: input, shape index: {}]   ;;  %s1600_s1 = inlined_call_operand.<no memory space> [shape: f32[1], index: 1, kind: input, shape index: {}]   ;;  %s1601_s2 = inlined_call_operand.vmem [shape: f32[2,18,74], index: 2, kind: input, shape index: {}]   ;;  %s1602_s3 = inlined_call_operand.vmem [shape: f32[36,72], index: 3, kind: input, shape index: {}]   ;;  %s1603_s4 = inlined_call_operand.vmem [shape: f32[9,72], index: 4, kind: input, shape index: {}]   ;;  %s1604_s5 = inlined_call_operand.hbm [shape: f32[2,16,16], index: 5, kind: output, shape index: {}]  }
   0x1   :  { %10 = sst [smem:[#allocation3]] %s1600_s1 }
   0x2   :  { %11 = vsyncpa [#allocation6], 0 }
   0x3   :  { %12 = vsyncpa [#allocation5], 0 }
   0x4   :  { %14 = vsyncpa [#allocation5 + $0x1], 0  ;;  %s1248_s20 = smov 0   ;;  %s1250_s21 = smov 0  }
   0x5   :  { %s1252_s22 = smov 0   ;;  %s1254_s23 = smov 0  }
   0x6 LB: > { %s1269_s1 = sadd.s32 4294967295, %s1200_s23   ;;  %s997_s24 = sadd.s32 4294967294, %s1200_s23   ;;  %s1200_s23 = sphi %s1254_s23, %s1611_s23   ;;  %s1196_s22 = sphi %s1252_s22, %s1610_s22   ;;  %s1192_s21 = sphi %s1250_s21, %s1609_s21   ;;  %s1188_s20 = sphi %s1248_s20, %s1608_s20  }
   0x7   : > { %s1273_s25 = sadd.s32 1, %s1200_s23   ;;  %s137_s26 = sadd.s32 1, %s1196_s22 }
   0x8   : > { %s134_s27 = ssub.s32 %s1200_s23, %s1273_s25  ;;  %p147_p0 = scmp.ne.s32.totalorder %s1196_s22, %s1192_s21 }
   0x9   : > { %p135_p1 = scmp.eq.s32.totalorder %s134_s27, 0  ;;  %p148_p2 = scmp.eq.s32.totalorder %s1269_s1, 1 }
   0xa   : > { %p153_p3 = scmp.ne.s32.totalorder %s1192_s21, %s1188_s20  ;;  %p154_p4 = scmp.eq.s32.totalorder %s997_s24, 1 }
   0xb   : > { %s1284_s28 = scalar_select %p135_p1, %s1196_s22, %s137_s26  }
   0xc   : > { %p1286_p5 = por %p148_p2, %p147_p0  ;;  %p1290_p6 = por %p154_p4, %p153_p3 }
   0xd   : > { %p998_p7 = scmp.ge.s32.totalorder %s1200_s23, 1  ;;  %p161_p8 = scmp.lt.s32.totalorder %s1200_s23, 3 }
   0xe   : > { %p1074_p9 = scmp.eq.s32.totalorder %s1269_s1, 0  ;;  %s174_s9 = sshll.u32 %s1599_s0, 4  ;;  %s175_s9 = int_to_ptr.vmem [resolvable:$true] %s174_s9 }
   0xf   : > { %p1297_p10 = pnand %p998_p7, %p161_p8  ;;  %s1121_s10 = scalar_lea.vmem %s175_s9, 16 }
  0x10   : > { %p1122_p13 = scmp.ne.s32.totalorder %s175_s9, %s1121_s10  ;;  %p1129_p3 = scmp.lt.s32.totalorder %s175_s9, %s175_s9 }
  0x11   : > { %p1066_p11 = pneg %p1297_p10  ;;  %p1130_p4 = scmp.lt.s32.totalorder %s1121_s10, %s1121_s10 }
  0x13   : > { %p1067_p12 = pnand %p1074_p9, %p1066_p11  ;;  %p1131_p7 = por %p1130_p4, %p1129_p3 }
  0x15   : > { %p1123_p0 = pneg %p1067_p12 }
  0x17   : > { %p1124_p1 = pnand %p1123_p0, %p1122_p13 }
  0x19   : > { %p1125_p2 = pneg %p1124_p1 }
  0x1b   : > { %p1132_p8 = pnand %p1131_p7, %p1125_p2 }
  0x1d   : > { %1135 = shalt.err (!%p1132_p8)
}
  0x1e   : > { %s1202_s11 = smov [#allocation4]   ;;  %204 = sbr.rel (%p1297_p10) target bundleno = 951 (0x3b7), region = 40 }
  0x1f   : > { %1069 = dma.vmem_to_smem (!%p1067_p12), %s175_s9, 16, %s1202_s11, [#allocation6]  }
  0x23   : > { %1179 = dma.done.wait (%p1074_p9), [#allocation6], 16  }
  0x24   : > { %1181 = vsyncadd (%p1074_p9), [#allocation6], 4294967280 }
  0x25   : > { %210 = sfence }
  0x26   : > { %p233_p11 = scmp.lt.s32.totalorder %s1269_s1, 1  ;;  %s1203_s17 = smov 126   ;;  %v1005_v6 = vld [vmem:[%s1602_s3] ss:$0 sm:$0xff]  ;;  %v1006_v7 = vld [vmem:[%s1602_s3 + $0x9] ss:$0 sm:$0xff] }
  0x27   : > { %s1204_s18 = smov 127   ;;  %v1007_v8 = vld [vmem:[%s1602_s3 + $0x12] ss:$0 sm:$0xff]  ;;  %v1008_v9 = vld [vmem:[%s1602_s3 + $0x1b] ss:$0 sm:$0xff]  ;;  %s1206_s15 = smov 110  }
  0x28   : > { %s234_s12 = scalar_select %p233_p11, %s1269_s1, 1  ;;  %v1009_v10 = vld [vmem:[%s1602_s3 + $0x1] ss:$0 sm:$0xff]  ;;  %v1017_v11 = vld [vmem:[%s1602_s3 + $0x3] ss:$0 sm:$0xff]  ;;  %vm238_vm0 = vcmask 605184  }
  0x29   : > { %v1013_v12 = vld [vmem:[%s1602_s3 + $0x2] ss:$0 sm:$0xff]  ;;  %v1018_v17 = vld [vmem:[%s1602_s3 + $0xc] ss:$0 sm:$0xff]  ;;  %v1019_v18 = vld [vmem:[%s1602_s3 + $0x15] ss:$0 sm:$0xff] }
  0x2a   : > { %s1059_s13 = smul.u32 24, %s234_s12  ;;  %v1020_v19 = vld [vmem:[%s1602_s3 + $0x1e] ss:$0 sm:$0xff]  ;;  %v1010_v20 = vld [vmem:[%s1602_s3 + $0xa] ss:$0 sm:$0xff]  ;;  %s1205_s12 = smov 92  }
  0x2b   : > { %v1011_v21 = vld [vmem:[%s1602_s3 + $0x13] ss:$0 sm:$0xff]  ;;  %v1012_v22 = vld [vmem:[%s1602_s3 + $0x1c] ss:$0 sm:$0xff]  ;;  %v1014_v27 = vld [vmem:[%s1602_s3 + $0xb] ss:$0 sm:$0xff] }
  0x2c   : > { %s237_s16 = scalar_lea.vmem %s1601_s2, %s1059_s13  ;;  %v1015_v28 = vld [vmem:[%s1602_s3 + $0x14] ss:$0 sm:$0xff]  ;;  %v1016_v29 = vld [vmem:[%s1602_s3 + $0x1d] ss:$0 sm:$0xff]  ;;  %vm241_vm1 = vcmask 599040   ;;  %s1041_s19 = sld [smem:[#allocation4 + $0x1]] }
  0x2d   : > { %v243_v0 = vld [vmem:[%s237_s16] sm:$0xff]  ;;  %v244_v1 = vld [vmem:[%s237_s16 + $0x8] sm:$0xff]  ;;  %s1042_s24 = sld [smem:[#allocation4 + $0x2]]  ;;  %s1208_s27 = smov 1   ;;  %vm641_vm2 = vcmask 138248   ;;  %vm678_vm3 = vcmask 285848  }
  0x2e   : > { %322 = vrot.lane.b32.xlu1 %v243_v0, %s1203_s17  ;;  %280 = vrot.lane.b32.xlu0 %v243_v0, %s1204_s18  ;;  %v360_v2 = vld [vmem:[%s237_s16 + $0x9] sm:$0xff]  ;;  %v359_v3 = vld [vmem:[%s237_s16 + $0x1] sm:$0xff]  ;;  %v250_v13 = vmul.f32 %v1005_v6, %v243_v0  ;;  %v257_v14 = vmul.f32 %v1006_v7, %v243_v0  ;;  %v264_v15 = vmul.f32 %v1007_v8, %v243_v0  ;;  %s1043_s26 = sld [smem:[#allocation4 + $0x3]]  ;;  %s1209_s6 = smov 19   ;;  %vm715_vm4 = vcmask 433448  }
  0x2f   : > { %v1327_v4 = vld [vmem:[%s237_s16 + $0xa] sm:$0xff]  ;;  %v1329_v5 = vld [vmem:[%s237_s16 + $0x2] sm:$0xff]  ;;  %v271_v16 = vmul.f32 %v1008_v9, %v243_v0  ;;  %v251_v23 = vmul.f32 %v1005_v6, %v244_v1  ;;  %v258_v24 = vmul.f32 %v1006_v7, %v244_v1  ;;  %v265_v25 = vmul.f32 %v1007_v8, %v244_v1  ;;  %s627_s16 = sld [smem:[#allocation4]]  ;;  %s1210_s7 = smov 37  }
  0x30   : > { %v272_v26 = vmul.f32 %v1008_v9, %v244_v1  ;;  %v1387_v32 = vmul.f32 %v1017_v11, %v360_v2  ;;  %v1389_v33 = vmul.f32 %v1018_v17, %v360_v2  ;;  %v1391_v34 = vmul.f32 %v1019_v18, %v360_v2  ;;  %v1021_v6 = vld [vmem:[%s1602_s3 + $0x4] ss:$0 sm:$0xff]  ;;  %s1211_s8 = smov 55   ;;  %s230_s13 = sand.u32 1, %s1192_s21  }
  0x31   : > { %v1393_v35 = vmul.f32 %v1020_v19, %v360_v2  ;;  %v366_v36 = vmul.f32 %v1017_v11, %v359_v3  ;;  %v375_v37 = vmul.f32 %v1018_v17, %v359_v3  ;;  %v384_v38 = vmul.f32 %v1019_v18, %v359_v3  ;;  %v1022_v17 = vld [vmem:[%s1602_s3 + $0xd] ss:$0 sm:$0xff]  ;;  %v1023_v18 = vld [vmem:[%s1602_s3 + $0x16] ss:$0 sm:$0xff]  ;;  %s902_s14 = sld [smem:[#allocation3]] }
  0x32   : > { %324 = vrot.lane.b32.xlu1 %v244_v1, %s1203_s17  ;;  %282 = vrot.lane.b32.xlu0 %v244_v1, %s1204_s18  ;;  %v393_v39 = vmul.f32 %v1020_v19, %v359_v3  ;;  %v1024_v19 = vld [vmem:[%s1602_s3 + $0x1f] ss:$0 sm:$0xff]  ;;  %vm752_vm5 = vcmask 581048   ;;  %vm906_vm6 = vcmask 130048  }
  0x36   : > { %406 = vrot.lane.b32.xlu1 %v360_v2, %s1204_s18  ;;  %404 = vrot.lane.b32.xlu0 %v359_v3, %s1204_s18 }
  0x3a   : > { %448 = vrot.lane.b32.xlu1 %v360_v2, %s1203_s17  ;;  %446 = vrot.lane.b32.xlu0 %v359_v3, %s1203_s17  ;;  %v1029_v2 = vld [vmem:[%s1602_s3 + $0x6] ss:$0 sm:$0xff]  ;;  %v1030_v3 = vld [vmem:[%s1602_s3 + $0xf] ss:$0 sm:$0xff] }
  0x3e   : > { %530 = vrot.lane.b32.xlu1 %v1327_v4, %s1204_s18  ;;  %528 = vrot.lane.b32.xlu0 %v1329_v5, %s1204_s18 }
  0x42   : > { %572 = vrot.lane.b32.xlu1 %v1327_v4, %s1203_s17  ;;  %570 = vrot.lane.b32.xlu0 %v1329_v5, %s1203_s17 }
  0xa0   : > { %v323_v30 = vpop.permute.xlu1 %322  ;;  %v281_v31 = vpop.permute.xlu0 %280 }
  0xa1   : > { %v286_v40 = vmul.f32 %v1009_v10, %v281_v31  ;;  %v295_v41 = vmul.f32 %v1010_v20, %v281_v31  ;;  %v304_v42 = vmul.f32 %v1011_v21, %v281_v31  ;;  %v313_v43 = vmul.f32 %v1012_v22, %v281_v31 }
  0xa2   : > { %v328_v44 = vmul.f32 %v1013_v12, %v323_v30  ;;  %v337_v45 = vmul.f32 %v1014_v27, %v323_v30  ;;  %v346_v46 = vmul.f32 %v1015_v28, %v323_v30  ;;  %v355_v47 = vmul.f32 %v1016_v29, %v323_v30 }
  0xa3   : > { %v288_v48 = vadd.f32 %v286_v40, %v250_v13  ;;  %v297_v49 = vadd.f32 %v295_v41, %v257_v14  ;;  %v306_v50 = vadd.f32 %v304_v42, %v264_v15  ;;  %v315_v51 = vadd.f32 %v313_v43, %v271_v16  ;;  %v1026_v43 = vld [vmem:[%s1602_s3 + $0xe] ss:$0 sm:$0xff] }
  0xa4   : > { %v325_v52 = vpop.permute.xlu1 %324  ;;  %v283_v53 = vpop.permute.xlu0 %282 }
  0xa5   : > { %v329_v54 = vmul.f32 %v1013_v12, %v325_v52  ;;  %v338_v55 = vmul.f32 %v1014_v27, %v325_v52  ;;  %v347_v56 = vmul.f32 %v1015_v28, %v325_v52  ;;  %v356_v57 = vmul.f32 %v1016_v29, %v325_v52 }
  0xa6   : > { %v330_v58 = vadd.f32 %v328_v44, %v288_v48  ;;  %v339_v59 = vadd.f32 %v337_v45, %v297_v49  ;;  %v348_v60 = vadd.f32 %v346_v46, %v306_v50  ;;  %v357_v61 = vadd.f32 %v355_v47, %v315_v51  ;;  %v1027_v44 = vld [vmem:[%s1602_s3 + $0x17] ss:$0 sm:$0xff]  ;;  %v1028_v45 = vld [vmem:[%s1602_s3 + $0x20] ss:$0 sm:$0xff]  ;;  %v1031_v50 = vld [vmem:[%s1602_s3 + $0x18] ss:$0 sm:$0xff] }
  0xa7   : > { %v287_v62 = vmul.f32 %v1009_v10, %v283_v53  ;;  %v296_v63 = vmul.f32 %v1010_v20, %v283_v53  ;;  %v305_v0 = vmul.f32 %v1011_v21, %v283_v53  ;;  %v314_v1 = vmul.f32 %v1012_v22, %v283_v53 }
  0xa8   : > { %v407_v7 = vpop.permute.xlu1 %406  ;;  %v405_v8 = vpop.permute.xlu0 %404  ;;  %v368_v9 = vadd.f32 %v366_v36, %v330_v58  ;;  %v377_v11 = vadd.f32 %v375_v37, %v339_v59  ;;  %v386_v10 = vadd.f32 %v384_v38, %v348_v60  ;;  %v395_v12 = vadd.f32 %v393_v39, %v357_v61  ;;  %v1025_v36 = vld [vmem:[%s1602_s3 + $0x5] ss:$0 sm:$0xff] }
  0xa9   : > { %v289_v13 = vadd.f32 %v287_v62, %v251_v23  ;;  %v298_v14 = vadd.f32 %v296_v63, %v258_v24  ;;  %v307_v15 = vadd.f32 %v305_v0, %v265_v25  ;;  %v316_v16 = vadd.f32 %v314_v1, %v272_v26 }
  0xaa   : > { %v1414_v20 = vmul.f32 %v1029_v2, %v1327_v4  ;;  %v1417_v21 = vmul.f32 %v1029_v2, %v1329_v5  ;;  %v1420_v22 = vmul.f32 %v1030_v3, %v1327_v4  ;;  %v1423_v23 = vmul.f32 %v1030_v3, %v1329_v5 }
  0xab   : > { %v331_v24 = vadd.f32 %v329_v54, %v289_v13  ;;  %v340_v25 = vadd.f32 %v338_v55, %v298_v14  ;;  %v349_v26 = vadd.f32 %v347_v56, %v307_v15  ;;  %v358_v27 = vadd.f32 %v356_v57, %v316_v16  ;;  %v1032_v57 = vld [vmem:[%s1602_s3 + $0x21] ss:$0 sm:$0xff] }
  0xac   : > { %v411_v28 = vmul.f32 %v1021_v6, %v407_v7  ;;  %v420_v29 = vmul.f32 %v1022_v17, %v407_v7  ;;  %v429_v30 = vmul.f32 %v1023_v18, %v407_v7  ;;  %v438_v31 = vmul.f32 %v1024_v19, %v407_v7  ;;  %v449_v37 = vpop.permute.xlu1 %448  ;;  %v447_v38 = vpop.permute.xlu0 %446 }
  0xad   : > { %v369_v39 = vadd.f32 %v1387_v32, %v331_v24  ;;  %v378_v40 = vadd.f32 %v1389_v33, %v340_v25  ;;  %v387_v41 = vadd.f32 %v1391_v34, %v349_v26  ;;  %v396_v42 = vadd.f32 %v1393_v35, %v358_v27 }
  0xae   : > { %v410_v46 = vmul.f32 %v1021_v6, %v405_v8  ;;  %v419_v32 = vmul.f32 %v1022_v17, %v405_v8  ;;  %v428_v47 = vmul.f32 %v1023_v18, %v405_v8  ;;  %v437_v33 = vmul.f32 %v1024_v19, %v405_v8  ;;  %v1033_v6 = vld [vmem:[%s1602_s3 + $0x7] ss:$0 sm:$0xff] }
  0xaf   : > { %v413_v48 = vadd.f32 %v411_v28, %v369_v39  ;;  %v422_v34 = vadd.f32 %v420_v29, %v378_v40  ;;  %v431_v49 = vadd.f32 %v429_v30, %v387_v41  ;;  %v440_v35 = vadd.f32 %v438_v31, %v396_v42  ;;  %v1038_v31 = vld [vmem:[%s1602_s3 + $0x11] ss:$0 sm:$0xff]  ;;  %v1035_v40 = vld [vmem:[%s1602_s3 + $0x19] ss:$0 sm:$0xff] }
  0xb0   : > { %v453_v51 = vmul.f32 %v1025_v36, %v449_v37  ;;  %v462_v52 = vmul.f32 %v1026_v43, %v449_v37  ;;  %v471_v53 = vmul.f32 %v1027_v44, %v449_v37  ;;  %v480_v54 = vmul.f32 %v1028_v45, %v449_v37  ;;  %v1444_v55 = vpop.permute.xlu1 %530  ;;  %v1446_v56 = vpop.permute.xlu0 %528 }
  0xb1   : > { %v452_v58 = vmul.f32 %v1025_v36, %v447_v38  ;;  %v461_v59 = vmul.f32 %v1026_v43, %v447_v38  ;;  %v470_v60 = vmul.f32 %v1027_v44, %v447_v38  ;;  %v479_v61 = vmul.f32 %v1028_v45, %v447_v38 }
  0xb2   : > { %v412_v62 = vadd.f32 %v410_v46, %v368_v9  ;;  %v421_v63 = vadd.f32 %v419_v32, %v377_v11  ;;  %v509_v0 = vmul.f32 %v1031_v50, %v1327_v4  ;;  %v508_v1 = vmul.f32 %v1031_v50, %v1329_v5  ;;  %v1037_v9 = vld [vmem:[%s1602_s3 + $0x8] ss:$0 sm:$0xff]  ;;  %v1039_v46 = vld [vmem:[%s1602_s3 + $0x1a] ss:$0 sm:$0xff]  ;;  %v1036_v32 = vld [vmem:[%s1602_s3 + $0x22] ss:$0 sm:$0xff] }
  0xb3   : > { %v430_v2 = vadd.f32 %v428_v47, %v386_v10  ;;  %v439_v3 = vadd.f32 %v437_v33, %v395_v12  ;;  %v518_v7 = vmul.f32 %v1032_v57, %v1327_v4  ;;  %v517_v8 = vmul.f32 %v1032_v57, %v1329_v5  ;;  %v1034_v5 = vld [vmem:[%s1602_s3 + $0x10] ss:$0 sm:$0xff] }
  0xb4   : > { %v455_v13 = vadd.f32 %v453_v51, %v413_v48  ;;  %v464_v14 = vadd.f32 %v462_v52, %v422_v34  ;;  %v454_v15 = vadd.f32 %v452_v58, %v412_v62  ;;  %v463_v16 = vadd.f32 %v461_v59, %v421_v63  ;;  %v573_v11 = vpop.permute.xlu1 %572  ;;  %v571_v17 = vpop.permute.xlu0 %570  ;;  %v1040_v52 = vld [vmem:[%s1602_s3 + $0x23] ss:$0 sm:$0xff] }
  0xb5   : > { %v473_v10 = vadd.f32 %v471_v53, %v431_v49  ;;  %v482_v12 = vadd.f32 %v480_v54, %v440_v35  ;;  %v472_v18 = vadd.f32 %v470_v60, %v430_v2  ;;  %v481_v19 = vadd.f32 %v479_v61, %v439_v3 }
  0xb6   : > { %v535_v24 = vmul.f32 %v1033_v6, %v1444_v55  ;;  %v534_v4 = vmul.f32 %v1033_v6, %v1446_v56  ;;  %v577_v25 = vmul.f32 %v1037_v9, %v573_v11  ;;  %v576_v26 = vmul.f32 %v1037_v9, %v571_v17 }
  0xb7   : > { %v493_v27 = vadd.f32 %v1414_v20, %v455_v13  ;;  %v492_v28 = vadd.f32 %v1417_v21, %v454_v15  ;;  %v502_v29 = vadd.f32 %v1420_v22, %v464_v14  ;;  %v501_v30 = vadd.f32 %v1423_v23, %v463_v16 }
  0xb8   : > { %v511_v36 = vadd.f32 %v509_v0, %v473_v10  ;;  %v510_v37 = vadd.f32 %v508_v1, %v472_v18  ;;  %v520_v38 = vadd.f32 %v518_v7, %v482_v12  ;;  %v519_v39 = vadd.f32 %v517_v8, %v481_v19 }
  0xb9   : > { %v544_v20 = vmul.f32 %v1034_v5, %v1444_v55  ;;  %v543_v21 = vmul.f32 %v1034_v5, %v1446_v56  ;;  %v537_v41 = vadd.f32 %v535_v24, %v493_v27  ;;  %v536_v22 = vadd.f32 %v534_v4, %v492_v28 }
  0xba   : > { %v586_v42 = vmul.f32 %v1038_v31, %v573_v11  ;;  %v585_v23 = vmul.f32 %v1038_v31, %v571_v17  ;;  %v553_v45 = vmul.f32 %v1035_v40, %v1444_v55  ;;  %v552_v47 = vmul.f32 %v1035_v40, %v1446_v56 }
  0xbb   : > { %v579_v43 = vadd.f32 %v577_v25, %v537_v41  ;;  %v578_v44 = vadd.f32 %v576_v26, %v536_v22  ;;  %v546_v33 = vadd.f32 %v544_v20, %v502_v29  ;;  %v545_v48 = vadd.f32 %v543_v21, %v501_v30 }
  0xbc   : > { %v595_v34 = vmul.f32 %v1039_v46, %v573_v11  ;;  %v594_v49 = vmul.f32 %v1039_v46, %v571_v17  ;;  %v562_v51 = vmul.f32 %v1036_v32, %v1444_v55  ;;  %v561_v53 = vmul.f32 %v1036_v32, %v1446_v56 }
  0xbd   : > { %611 = vrot.lane.b32.xlu1 %v579_v43, %s1205_s12  ;;  %609 = vrot.lane.b32.xlu0 %v578_v44, %s1205_s12  ;;  %v588_v35 = vadd.f32 %v586_v42, %v546_v33  ;;  %v587_v50 = vadd.f32 %v585_v23, %v545_v48  ;;  %v555_v54 = vadd.f32 %v553_v45, %v511_v36  ;;  %v628_v19 = vstv %s627_s16  ;;  %s1003_s16 = sshll.u32 %s230_s13, 4 }
  0xbe   : > { %v554_v57 = vadd.f32 %v552_v47, %v510_v37  ;;  %v604_v58 = vmul.f32 %v1040_v52, %v573_v11  ;;  %v603_v59 = vmul.f32 %v1040_v52, %v571_v17  ;;  %v564_v55 = vadd.f32 %v562_v51, %v520_v38 }
  0xbf   : > { %v597_v60 = vadd.f32 %v595_v34, %v555_v54  ;;  %v563_v62 = vadd.f32 %v561_v53, %v519_v39  ;;  %v1207_v11 = vmov 0.0   ;;  %v665_v28 = vstv %s1041_s19  ;;  %s1058_s19 = sshll.u32 %s1269_s1, 8  ;;  %s1559_s1 = scalar_lea.sflag [#allocation5], %s230_s13 }
  0xc0   : > { %v596_v61 = vadd.f32 %v594_v49, %v554_v57  ;;  %v606_v63 = vadd.f32 %v604_v58, %v564_v55  ;;  %240 = vst.msk [vmem:[#allocation2 + $0x8] sm:$0xff] %vm238_vm0, %v1207_v11  ;;  %239 = vst.msk [vmem:[#allocation2] sm:$0xff] %vm238_vm0, %v1207_v11  ;;  %v702_v20 = vstv %s1042_s24  ;;  %v739_v46 = vstv %s1043_s26  ;;  %s1555_s26 = scalar_lea.hbm %s1604_s5, %s1058_s19 }
  0xc1   : > { %648 = vrot.lane.b32.xlu1 %v588_v35, %s1205_s12  ;;  %646 = vrot.lane.b32.xlu0 %v587_v50, %s1205_s12  ;;  %v605_v0 = vadd.f32 %v603_v59, %v563_v62  ;;  %242 = vst.msk [vmem:[#allocation2 + $0x10] sm:$0x3] %vm241_vm1, %v1207_v11  ;;  %v1047_v11 = vld [vmem:[%s1603_s4 + $0x3] ss:$0 sm:$0xff] }
  0xc5   : > { %685 = vrot.lane.b32.xlu1 %v597_v60, %s1205_s12  ;;  %683 = vrot.lane.b32.xlu0 %v596_v61, %s1205_s12 }
  0xc9   : > { %722 = vrot.lane.b32.xlu1 %v606_v63, %s1205_s12  ;;  %720 = vrot.lane.b32.xlu0 %v605_v0, %s1205_s12 }
 0x12f   : > { %v612_v56 = vpop.permute.xlu1 %611  ;;  %v610_v1 = vpop.permute.xlu0 %609 }
 0x130   : > { %v616_v2 = vadd.f32 %v612_v56, %v579_v43  ;;  %v615_v3 = vadd.f32 %v610_v1, %v578_v44 }
 0x132   : > { %621 = vrot.lane.b32.xlu1 %v616_v2, %s1206_s15  ;;  %619 = vrot.lane.b32.xlu0 %v615_v3, %s1206_s15 }
 0x133   : > { %v649_v6 = vpop.permute.xlu1 %648  ;;  %v647_v7 = vpop.permute.xlu0 %646 }
 0x134   : > { %v653_v8 = vadd.f32 %v649_v6, %v588_v35  ;;  %v652_v13 = vadd.f32 %v647_v7, %v587_v50  ;;  %v1044_v6 = vld [vmem:[%s1603_s4] ss:$0 sm:$0xff] }
 0x136   : > { %658 = vrot.lane.b32.xlu1 %v653_v8, %s1206_s15  ;;  %656 = vrot.lane.b32.xlu0 %v652_v13, %s1206_s15 }
 0x137   : > { %v686_v14 = vpop.permute.xlu1 %685  ;;  %v684_v15 = vpop.permute.xlu0 %683 }
 0x138   : > { %v690_v16 = vadd.f32 %v686_v14, %v597_v60  ;;  %v689_v9 = vadd.f32 %v684_v15, %v596_v61  ;;  %v1046_v15 = vld [vmem:[%s1603_s4 + $0x2] ss:$0 sm:$0xff] }
 0x13a   : > { %695 = vrot.lane.b32.xlu1 %v690_v16, %s1206_s15  ;;  %693 = vrot.lane.b32.xlu0 %v689_v9, %s1206_s15 }
 0x13b   : > { %v723_v17 = vpop.permute.xlu1 %722  ;;  %v721_v10 = vpop.permute.xlu0 %720 }
 0x13c   : > { %v727_v12 = vadd.f32 %v723_v17, %v606_v63  ;;  %v726_v18 = vadd.f32 %v721_v10, %v605_v0 }
 0x13e   : > { %732 = vrot.lane.b32.xlu1 %v727_v12, %s1206_s15  ;;  %730 = vrot.lane.b32.xlu0 %v726_v18, %s1206_s15 }
 0x1a4   : > { %v622_v24 = vpop.permute.xlu1 %621  ;;  %v620_v4 = vpop.permute.xlu0 %619 }
 0x1a5   : > { %v626_v5 = vadd.f32 %v622_v24, %v616_v2  ;;  %v625_v25 = vadd.f32 %v620_v4, %v615_v3  ;;  %v1045_v3 = vld [vmem:[%s1603_s4 + $0x1] ss:$0 sm:$0xff]  ;;  %v1048_v4 = vld [vmem:[%s1603_s4 + $0x4] ss:$0 sm:$0xff] }
 0x1a7   : > { %v630_v26 = vadd.f32 %v628_v19, %v626_v5  ;;  %v629_v27 = vadd.f32 %v628_v19, %v625_v25 }
 0x1a8   : > { %v659_v29 = vpop.permute.xlu1 %658  ;;  %v657_v30 = vpop.permute.xlu0 %656 }
 0x1a9   : > { %v632_v31 = vmax.f32 %v630_v26, 0.0  ;;  %v631_v36 = vmax.f32 %v629_v27, 0.0  ;;  %v663_v37 = vadd.f32 %v659_v29, %v653_v8  ;;  %v662_v38 = vadd.f32 %v657_v30, %v652_v13 }
 0x1ab   : > { %v667_v39 = vadd.f32 %v665_v28, %v663_v37  ;;  %v666_v40 = vadd.f32 %v665_v28, %v662_v38  ;;  %637 = vrot.lane.b32.xlu1 %v632_v31, %s1208_s27  ;;  %635 = vrot.lane.b32.xlu0 %v631_v36, %s1208_s27  ;;  %v1049_v38 = vld [vmem:[%s1603_s4 + $0x5] ss:$0 sm:$0xff]  ;;  %s1212_s27 = smov [#allocation7]  }
 0x1ac   : > { %v696_v21 = vpop.permute.xlu1 %695  ;;  %v694_v41 = vpop.permute.xlu0 %693 }
 0x1ad   : > { %v669_v22 = vmax.f32 %v667_v39, 0.0  ;;  %v668_v42 = vmax.f32 %v666_v40, 0.0  ;;  %v700_v23 = vadd.f32 %v696_v21, %v690_v16  ;;  %v699_v43 = vadd.f32 %v694_v41, %v689_v9  ;;  %v1050_v39 = vld [vmem:[%s1603_s4 + $0x6] ss:$0 sm:$0xff] }
 0x1af   : > { %v704_v44 = vadd.f32 %v702_v20, %v700_v23  ;;  %v703_v45 = vadd.f32 %v702_v20, %v699_v43  ;;  %674 = vrot.lane.b32.xlu1 %v669_v22, %s1209_s6  ;;  %672 = vrot.lane.b32.xlu0 %v668_v42, %s1209_s6  ;;  %v1051_v23 = vld [vmem:[%s1603_s4 + $0x7] ss:$0 sm:$0xff]  ;;  %s1140_s6 = sshll.u32 %s1212_s27, 4  ;;  %s1141_s6 = int_to_ptr.vmem [resolvable:$false] %s1140_s6 }
 0x1b0   : > { %v733_v32 = vpop.permute.xlu1 %732  ;;  %v731_v47 = vpop.permute.xlu0 %730 }
 0x1b1   : > { %v706_v33 = vmax.f32 %v704_v44, 0.0  ;;  %v705_v48 = vmax.f32 %v703_v45, 0.0  ;;  %v737_v34 = vadd.f32 %v733_v32, %v727_v12  ;;  %v736_v49 = vadd.f32 %v731_v47, %v726_v18 }
 0x1b3   : > { %v741_v35 = vadd.f32 %v739_v46, %v737_v34  ;;  %v740_v50 = vadd.f32 %v739_v46, %v736_v49  ;;  %711 = vrot.lane.b32.xlu1 %v706_v33, %s1210_s7  ;;  %709 = vrot.lane.b32.xlu0 %v705_v48, %s1210_s7  ;;  %s1142_s7 = scalar_lea.vmem %s1141_s6, 512 }
 0x1b5   : > { %v743_v51 = vmax.f32 %v741_v35, 0.0  ;;  %v742_v52 = vmax.f32 %v740_v50, 0.0  ;;  %v1052_v35 = vld [vmem:[%s1603_s4 + $0x8] ss:$0 sm:$0xff] }
 0x1b7   : > { %748 = vrot.lane.b32.xlu1 %v743_v51, %s1211_s8  ;;  %746 = vrot.lane.b32.xlu0 %v742_v52, %s1211_s8 }
 0x21d   : > { %v638_v53 = vpop.permute.xlu1 %637  ;;  %v636_v54 = vpop.permute.xlu0 %635 }
 0x21e   : > { %643 = vst.msk [vmem:[#allocation2 + $0x9] sm:$0xff] %vm641_vm2, %v638_v53  ;;  %642 = vst.msk [vmem:[#allocation2 + $0x1] sm:$0xff] %vm641_vm2, %v636_v54 }
 0x221   : > { %v675_v57 = vpop.permute.xlu1 %674  ;;  %v673_v58 = vpop.permute.xlu0 %672 }
 0x222   : > { %680 = vst.msk [vmem:[#allocation2 + $0x9] sm:$0xff] %vm678_vm3, %v675_v57  ;;  %679 = vst.msk [vmem:[#allocation2 + $0x1] sm:$0xff] %vm678_vm3, %v673_v58 }
 0x225   : > { %v712_v59 = vpop.permute.xlu1 %711  ;;  %v710_v60 = vpop.permute.xlu0 %709 }
 0x226   : > { %717 = vst.msk [vmem:[#allocation2 + $0x9] sm:$0xff] %vm715_vm4, %v712_v59  ;;  %716 = vst.msk [vmem:[#allocation2 + $0x1] sm:$0xff] %vm715_vm4, %v710_v60 }
 0x229   : > { %v749_v61 = vpop.permute.xlu1 %748  ;;  %v747_v55 = vpop.permute.xlu0 %746 }
 0x22a   : > { %754 = vst.msk [vmem:[#allocation2 + $0x9] sm:$0xff] %vm752_vm5, %v749_v61  ;;  %753 = vst.msk [vmem:[#allocation2 + $0x1] sm:$0xff] %vm752_vm5, %v747_v55 }
 0x231   : > { %v756_v62 = vld [vmem:[#allocation2 + $0x8] sm:$0xff]  ;;  %v755_v63 = vld [vmem:[#allocation2] sm:$0xff] }
 0x232   : > { %773 = vrot.lane.b32.xlu1 %v756_v62, %s1204_s18  ;;  %771 = vrot.lane.b32.xlu0 %v755_v63, %s1204_s18  ;;  %v797_v0 = vld [vmem:[#allocation2 + $0x9] sm:$0xff]  ;;  %v796_v56 = vld [vmem:[#allocation2 + $0x1] sm:$0xff]  ;;  %v763_v16 = vmul.f32 %v1044_v6, %v756_v62  ;;  %v762_v9 = vmul.f32 %v1044_v6, %v755_v63 }
 0x233   : > { %v840_v1 = vld [vmem:[#allocation2 + $0xa] sm:$0xff]  ;;  %v839_v2 = vld [vmem:[#allocation2 + $0x2] sm:$0xff]  ;;  %v804_v5 = vmul.f32 %v1047_v11, %v797_v0  ;;  %v803_v25 = vmul.f32 %v1047_v11, %v796_v56 }
 0x234   : > { %v847_v43 = vmul.f32 %v1050_v39, %v840_v1  ;;  %v846_v44 = vmul.f32 %v1050_v39, %v839_v2 }
 0x236   : > { %788 = vrot.lane.b32.xlu1 %v756_v62, %s1203_s17  ;;  %786 = vrot.lane.b32.xlu0 %v755_v63, %s1203_s17  ;;  %v903_v63 = vstv %s902_s14 }
 0x23a   : > { %816 = vrot.lane.b32.xlu1 %v797_v0, %s1204_s18  ;;  %814 = vrot.lane.b32.xlu0 %v796_v56, %s1204_s18 }
 0x23e   : > { %831 = vrot.lane.b32.xlu1 %v797_v0, %s1203_s17  ;;  %829 = vrot.lane.b32.xlu0 %v796_v56, %s1203_s17 }
 0x242   : > { %859 = vrot.lane.b32.xlu1 %v840_v1, %s1204_s18  ;;  %857 = vrot.lane.b32.xlu0 %v839_v2, %s1204_s18  ;;  %s232_s18 = scalar_lea.vmem [#allocation7], %s1003_s16 }
 0x246   : > { %874 = vrot.lane.b32.xlu1 %v840_v1, %s1203_s17  ;;  %872 = vrot.lane.b32.xlu0 %v839_v2, %s1203_s17  ;;  %s923_s17 = sshll.u32 %s232_s18, 4  ;;  %s1557_s17 = int_to_ptr.vmem [resolvable:$true] %s923_s17 }
 0x247   : > { %p1143_p13 = scmp.lt.s32.totalorder %s1557_s17, %s1141_s6 }
 0x2a4   : > { %v774_v7 = vpop.permute.xlu1 %773  ;;  %v772_v8 = vpop.permute.xlu0 %771 }
 0x2a5   : > { %v778_v13 = vmul.f32 %v1045_v3, %v774_v7  ;;  %v777_v14 = vmul.f32 %v1045_v3, %v772_v8 }
 0x2a7   : > { %v780_v12 = vadd.f32 %v778_v13, %v763_v16  ;;  %v779_v18 = vadd.f32 %v777_v14, %v762_v9 }
 0x2a8   : > { %v789_v17 = vpop.permute.xlu1 %788  ;;  %v787_v10 = vpop.permute.xlu0 %786 }
 0x2a9   : > { %v793_v19 = vmul.f32 %v1046_v15, %v789_v17  ;;  %v792_v24 = vmul.f32 %v1046_v15, %v787_v10 }
 0x2ab   : > { %v795_v26 = vadd.f32 %v793_v19, %v780_v12  ;;  %v794_v27 = vadd.f32 %v792_v24, %v779_v18 }
 0x2ac   : > { %v817_v28 = vpop.permute.xlu1 %816  ;;  %v815_v29 = vpop.permute.xlu0 %814 }
 0x2ad   : > { %v806_v30 = vadd.f32 %v804_v5, %v795_v26  ;;  %v821_v31 = vmul.f32 %v1048_v4, %v817_v28  ;;  %v805_v36 = vadd.f32 %v803_v25, %v794_v27  ;;  %v820_v37 = vmul.f32 %v1048_v4, %v815_v29 }
 0x2af   : > { %v823_v21 = vadd.f32 %v821_v31, %v806_v30  ;;  %v822_v41 = vadd.f32 %v820_v37, %v805_v36 }
 0x2b0   : > { %v832_v40 = vpop.permute.xlu1 %831  ;;  %v830_v20 = vpop.permute.xlu0 %829 }
 0x2b1   : > { %v836_v22 = vmul.f32 %v1049_v38, %v832_v40  ;;  %v835_v42 = vmul.f32 %v1049_v38, %v830_v20 }
 0x2b3   : > { %v838_v45 = vadd.f32 %v836_v22, %v823_v21  ;;  %v837_v46 = vadd.f32 %v835_v42, %v822_v41 }
 0x2b4   : > { %v860_v32 = vpop.permute.xlu1 %859  ;;  %v858_v47 = vpop.permute.xlu0 %857 }
 0x2b5   : > { %v849_v33 = vadd.f32 %v847_v43, %v838_v45  ;;  %v864_v48 = vmul.f32 %v1051_v23, %v860_v32  ;;  %v848_v34 = vadd.f32 %v846_v44, %v837_v46  ;;  %v863_v49 = vmul.f32 %v1051_v23, %v858_v47 }
 0x2b7   : > { %v866_v52 = vadd.f32 %v864_v48, %v849_v33  ;;  %v865_v53 = vadd.f32 %v863_v49, %v848_v34 }
 0x2b8   : > { %v875_v50 = vpop.permute.xlu1 %874  ;;  %v873_v51 = vpop.permute.xlu0 %872 }
 0x2b9   : > { %v879_v54 = vmul.f32 %v1052_v35, %v875_v50  ;;  %v878_v57 = vmul.f32 %v1052_v35, %v873_v51 }
 0x2bb   : > { %v881_v58 = vadd.f32 %v879_v54, %v866_v52  ;;  %v880_v59 = vadd.f32 %v878_v57, %v865_v53 }
 0x2bd   : > { %886 = vrot.lane.b32.xlu1 %v881_v58, %s1205_s12  ;;  %884 = vrot.lane.b32.xlu0 %v880_v59, %s1205_s12 }
 0x32f   : > { %v887_v60 = vpop.permute.xlu1 %886  ;;  %v885_v61 = vpop.permute.xlu0 %884 }
 0x330   : > { %v891_v55 = vadd.f32 %v887_v60, %v881_v58  ;;  %v890_v62 = vadd.f32 %v885_v61, %v880_v59 }
 0x332   : > { %896 = vrot.lane.b32.xlu1 %v891_v55, %s1206_s15  ;;  %894 = vrot.lane.b32.xlu0 %v890_v62, %s1206_s15  ;;  %s1136_s15 = scalar_lea.vmem %s1557_s17, 256 }
 0x333   : > { %p1137_p9 = scmp.ne.s32.totalorder %s1557_s17, %s1136_s15  ;;  %p1144_p0 = scmp.lt.s32.totalorder %s1142_s7, %s1136_s15 }
 0x335   : > { %p1138_p10 = pnand %p1137_p9, %p1286_p5  ;;  %p1145_p1 = por %p1144_p0, %p1143_p13 }
 0x337   : > { %p1139_p12 = pneg %p1138_p10 }
 0x339   : > { %p1146_p2 = pnand %p1145_p1, %p1139_p12 }
 0x3a4   : > { %v897_v0 = vpop.permute.xlu1 %896  ;;  %v895_v56 = vpop.permute.xlu0 %894 }
 0x3a5   : > { %v901_v1 = vadd.f32 %v897_v0, %v891_v55  ;;  %v900_v2 = vadd.f32 %v895_v56, %v890_v62 }
 0x3a7   : > { %v905_v3 = vadd.f32 %v903_v63, %v901_v1  ;;  %v904_v6 = vadd.f32 %v903_v63, %v900_v2 }
 0x3a9   : > { %908 = vst.msk [vmem:[%s232_s18 + $0x8] sm:$0xff] %vm906_vm6, %v905_v3  ;;  %907 = vst.msk [vmem:[%s232_s18] sm:$0xff] %vm906_vm6, %v904_v6 }
 0x3aa   : > { %1149 = shalt.err (!%p1146_p2)
}
 0x3ab   : > { %s1150_s8 = scalar_lea.hbm %s1555_s26, 256  ;;  %s1154_s11 = scalar_lea.hbm %s1604_s5, 512 }
 0x3ac   : > { %p1151_p3 = scmp.ne.s32.totalorder %s1555_s26, %s1150_s8  ;;  %p1155_p8 = scmp.lt.s32.totalorder %s1555_s26, %s1604_s5 }
 0x3ad   : > { %p1156_p11 = scmp.lt.s32.totalorder %s1154_s11, %s1150_s8 }
 0x3ae   : > { %p1152_p4 = pnand %p1151_p3, %p1286_p5 }
 0x3af   : > { %p1157_p9 = por %p1156_p11, %p1155_p8 }
 0x3b0   : > { %p1153_p7 = pneg %p1152_p4 }
 0x3b2   : > { %p1158_p10 = pnand %p1157_p9, %p1153_p7 }
 0x3b4   : > { %1161 = shalt.err (!%p1158_p10)
}
 0x3b5   : > { %s1213_s16 = smov 128   ;;  %s1214_s18 = smov 8  }
 0x3b6   : > { %1064 = dma.vmem_to_hbm [thread:$0]  (%p1286_p5), %s1557_s17, 256, %s1555_s26, %s1559_s1, %s1213_s16, %s1213_s16, %s1214_s18  }
 0x3b7 PF: > { %p1076_p12 = scmp.ge.s32.totalorder %s1200_s23, 2  ;;  %s938_s19 = sand.u32 1, %s1188_s20  }
 0x3b8   : > { %s939_s12 = scalar_lea.sflag [#allocation5], %s938_s19 }
 0x3b9   : > { %p1071_p13 = pnand %p1076_p12, %p1290_p6 }
 0x3bb   : > { %p1072_p0 = pneg %p1071_p13 }
 0x3bd   : > { %1183 = dma.done.wait (%p1072_p0), %s939_s12, 256  }
 0x3be   : > { %1185 = vsyncadd (%p1072_p0), %s939_s12, 4294967040  ;;  %p17_p1 = scmp.ge.s32.totalorder %s1273_s25, 4   ;;  %s1608_s20 = smov %s1192_s21 }
 0x3bf   : > { %s1609_s21 = smov %s1196_s22  ;;  %s1610_s22 = smov %s1284_s28 }
 0x3c0   : > { %s1611_s23 = smov %s1273_s25  ;;  %19 = sbr.rel (!%p17_p1) target bundleno = 6 (0x6), region = 80 }
 0x3c5   :  { %944 = vsyncpa [#allocation5], 1 }
 0x3c6   :  { %946 = vsyncpa [#allocation5 + $0x1], 1 }
 0x3c7   :  { %947 = vsyncpa [#allocation6], 1 }
 0x3c8   :  { %949 = vsyncpa [#allocation6 + $0x1], 1 }

</bundles_post_ra>
